<compile_context>
chip_gen: v6e
topology: v6e:2x2x1
jax: 0.10.0
libtpu: 0.0.40
codegen_flags: <defaults>
</compile_context>

<pallas_src>
import functools

import jax
import jax.numpy as jnp
import numpy as np
from jax.experimental import pallas as pl
from jax.experimental.pallas import tpu as pltpu


def _round_up(x, m):
    return ((x + m - 1) // m) * m


# -----------------------------------------------------------------------------
# Fused Pallas kernel: LSTM stack + linear head, whole sequence in one step
# -----------------------------------------------------------------------------
def _lstm_fused_kernel(*refs, num_layers, hidden, seq_len, batch_pad,
                       classification):
    """Ref layout (inputs, then output, then scratch):

      x2_ref : (T*Bp, D)        time-major, batch padded to Bp, flattened 2-D
      per layer l: wih (Din,4H), whh (H,4H), b (1,4H)   gate order [i,f,o,g]
      wlin (H, O), blin (1, O)
      out_ref : (Bp, O)
      act_ref : (T*Bp, H)   VMEM scratch, inter-layer activations
      xp_ref  : (T*Bp, 4H)  VMEM scratch, hoisted input projections
    """
    H = hidden
    T = seq_len
    Bp = batch_pad

    idx = 0
    x2_ref = refs[idx]; idx += 1
    layers = []
    for _ in range(num_layers):
        layers.append((refs[idx], refs[idx + 1], refs[idx + 2]))
        idx += 3
    wlin_ref, blin_ref = refs[idx], refs[idx + 1]; idx += 2
    out_ref = refs[idx]; idx += 1
    act_ref, xp_ref = refs[idx], refs[idx + 1]

    h_last = None
    for l, (wih_ref, whh_ref, b_ref) in enumerate(layers):
        # --- hoisted input projection: one big matmul for the whole sequence,
        #     off the serial recurrence path; pre-summed bias folded in.
        inp = x2_ref[...] if l == 0 else act_ref[...]
        xp_ref[...] = (
            jnp.dot(inp, wih_ref[...], preferred_element_type=jnp.float32)
            + b_ref[...])

        whh = whh_ref[...]                    # (H, 4H), resident across the loop
        last_layer = (l == num_layers - 1)

        def step(t, carry, _last=last_layer):
            h, c = carry
            row = pl.multiple_of(t * Bp, 8)   # 8-sublane aligned dynamic offset
            gates = xp_ref[pl.ds(row, Bp), :] + jnp.dot(
                h, whh, preferred_element_type=jnp.float32)        # (Bp, 4H)
            # Wrapper-permuted gate order [i, f, o, g]:
            # all sigmoids share ONE contiguous (Bp, 3H) slab -> one EUP push.
            sig = jax.nn.sigmoid(gates[:, :3 * H])
            i_g = sig[:, :H]
            f_g = sig[:, H:2 * H]
            o_g = sig[:, 2 * H:3 * H]
            g_g = jnp.tanh(gates[:, 3 * H:])
            c_new = f_g * c + i_g * g_g
            h_new = o_g * jnp.tanh(c_new)
            if not _last:
                # Next layer's hoisted matmul re-reads this whole slab.
                act_ref[pl.ds(row, Bp), :] = h_new
            return (h_new, c_new)

        h0 = jnp.zeros((Bp, H), jnp.float32)
        c0 = jnp.zeros((Bp, H), jnp.float32)
        h_last, _ = jax.lax.fori_loop(0, T, step, (h0, c0), unroll=True)

    # Linear head on the last timestep of the top layer
    # (== output[:, -1, :] with batch_first=True), fused as the epilogue.
    y = jnp.dot(h_last, wlin_ref[...],
                preferred_element_type=jnp.float32) + blin_ref[...]
    if classification:
        y = jax.nn.sigmoid(y)
    out_ref[...] = y


# -----------------------------------------------------------------------------
# Wrapper
# -----------------------------------------------------------------------------
def _permute_gates(w, H):
    """PyTorch gate order [i, f, g, o] -> kernel order [i, f, o, g] (columns)."""
    return jnp.concatenate([w[:, :2 * H], w[:, 3 * H:], w[:, 2 * H:3 * H]],
                           axis=1)


def lstm_forward(x, layer_params, head_params, model_type):
    """x: (B, T, D) batch_first, like the PyTorch module. Returns (B, output_dim)."""
    B, T, D = x.shape
    H = layer_params[0][1].shape[0]        # whh: (H, 4H)
    O = head_params[0].shape[-1]
    num_layers = len(layer_params)
    Bp = max(8, _round_up(B, 8))           # pad batch to a sublane multiple

    # time-major, batch-padded, flattened to 2-D so every in-kernel matmul is a
    # plain rank-2 MXU op and per-timestep rows are 8-aligned slices.
    xt = jnp.transpose(x, (1, 0, 2)).astype(jnp.float32)        # (T, B, D)
    xt = jnp.pad(xt, ((0, 0), (0, Bp - B), (0, 0)))
    x2 = xt.reshape(T * Bp, D)

    kernel = functools.partial(
        _lstm_fused_kernel, num_layers=num_layers, hidden=H, seq_len=T,
        batch_pad=Bp, classification=(model_type == "classification"))

    in_specs = [pl.BlockSpec((T * Bp, D), lambda i: (0, 0))]
    args = [x2]
    for (wih, whh, b) in layer_params:
        din = wih.shape[0]
        # Column permutation [i,f,g,o] -> [i,f,o,g] happens once, outside the
        # kernel (zero per-step cost), so the in-kernel sigmoid is one slab.
        wih_p = _permute_gates(wih.astype(jnp.float32), H)
        whh_p = _permute_gates(whh.astype(jnp.float32), H)
        b_p = _permute_gates(b.astype(jnp.float32), H)
        in_specs += [
            pl.BlockSpec((din, 4 * H), lambda i: (0, 0)),
            pl.BlockSpec((H, 4 * H), lambda i: (0, 0)),
            pl.BlockSpec((1, 4 * H), lambda i: (0, 0)),
        ]
        args += [wih_p, whh_p, b_p]
    w_lin, b_lin = head_params
    in_specs += [pl.BlockSpec((H, O), lambda i: (0, 0)),
                 pl.BlockSpec((1, O), lambda i: (0, 0))]
    args += [w_lin.astype(jnp.float32), b_lin.astype(jnp.float32)]

    out = pl.pallas_call(
        kernel,
        out_shape=jax.ShapeDtypeStruct((Bp, O), jnp.float32),
        grid_spec=pltpu.PrefetchScalarGridSpec(
            num_scalar_prefetch=0,
            grid=(1,),
            in_specs=in_specs,
            out_specs=pl.BlockSpec((Bp, O), lambda i: (0, 0)),
            scratch_shapes=[
                pltpu.VMEM((T * Bp, H), jnp.float32),      # inter-layer acts
                pltpu.VMEM((T * Bp, 4 * H), jnp.float32),  # hoisted projections
            ],
        ),
        compiler_params=pltpu.CompilerParams(
            dimension_semantics=("arbitrary",)),            # recurrence: serial
    )(*args)
    return out[:B]


# -----------------------------------------------------------------------------
# Parameter init (mimics PyTorch uniform(-1/sqrt(H), 1/sqrt(H)), already
# transposed + gate-concatenated in PYTORCH order [i,f,g,o], biases pre-summed)
# -----------------------------------------------------------------------------
def init_lstm_params(key, in_dim, hidden, num_layers, output_dim):
    params = []
    bound = 1.0 / np.sqrt(hidden)
    for layer in range(num_layers):
        d = in_dim if layer == 0 else hidden
        key, k1, k2, k3, k4 = jax.random.split(key, 5)
        wih = jax.random.uniform(k1, (d, 4 * hidden), jnp.float32, -bound, bound)
        whh = jax.random.uniform(k2, (hidden, 4 * hidden), jnp.float32, -bound, bound)
        bih = jax.random.uniform(k3, (1, 4 * hidden), jnp.float32, -bound, bound)
        bhh = jax.random.uniform(k4, (1, 4 * hidden), jnp.float32, -bound, bound)
        params.append((wih, whh, bih + bhh))     # bias pre-sum (perf)
    key, k1, k2 = jax.random.split(key, 3)
    lb = 1.0 / np.sqrt(hidden)
    w_lin = jax.random.uniform(k1, (hidden, output_dim), jnp.float32, -lb, lb)
    b_lin = jax.random.uniform(k2, (1, output_dim), jnp.float32, -lb, lb)
    return params, (w_lin, b_lin)


# -----------------------------------------------------------------------------
# Pure-JAX reference (correctness check; uses PyTorch gate order directly)
# -----------------------------------------------------------------------------
def lstm_reference(x, layer_params, head_params, model_type):
    out = jnp.transpose(x, (1, 0, 2)).astype(jnp.float32)    # (T, B, D)
    B = x.shape[0]
    for (wih, whh, b) in layer_params:
        H = whh.shape[0]

        def step(carry, x_t):
            h, c = carry
            gates = x_t @ wih + h @ whh + b
            i = jax.nn.sigmoid(gates[:, :H])
            f = jax.nn.sigmoid(gates[:, H:2 * H])
            g = jnp.tanh(gates[:, 2 * H:3 * H])
            o = jax.nn.sigmoid(gates[:, 3 * H:])
            c = f * c + i * g
            h = o * jnp.tanh(c)
            return (h, c), h

        h0 = jnp.zeros((B, H), jnp.float32)
        c0 = jnp.zeros((B, H), jnp.float32)
        _, ys = jax.lax.scan(step, (h0, c0), out)
        out = ys
    feat = out[-1]                       # (B, H): output[:, -1, :] (batch_first)
    w_lin, b_lin = head_params
    y = feat @ w_lin + b_lin
    if model_type == "classification":
        y = jax.nn.sigmoid(y)
    return y


# -----------------------------------------------------------------------------
if __name__ == "__main__":
    # LSTM(input_size=8, hidden_size=32, num_layers=2, model_type='regression')
    # x: (batch, seq, input_size) because batch_first=True.
    B, T = 2, 8
    input_size = 8
    hidden_size = 32
    num_layers = 2
    model_type = "regression"
    output_dim = 1 if model_type == "regression" else 2

    key = jax.random.PRNGKey(0)
    key, xkey = jax.random.split(key)
    x = jax.random.normal(xkey, (B, T, input_size), dtype=jnp.float32)

    layer_params, head_params = init_lstm_params(
        key, input_size, hidden_size, num_layers, output_dim)

    y = jax.block_until_ready(
        lstm_forward(x, layer_params, head_params, model_type))
    y_ref = jax.block_until_ready(
        lstm_reference(x, layer_params, head_params, model_type))

    np.testing.assert_allclose(np.asarray(y), np.asarray(y_ref),
                               rtol=1e-4, atol=1e-5)
    assert y.shape == (B, output_dim)

    print("KERNEL_OK")
</pallas_src>

<mosaic_0001>
module attributes {stable_mosaic.version = 11 : i64} {
  func.func @_lstm_fused_kernel(%arg0: i32, %arg1: memref<64x8xf32, #tpu.memory_space<vmem>>, %arg2: memref<8x128xf32, #tpu.memory_space<vmem>>, %arg3: memref<32x128xf32, #tpu.memory_space<vmem>>, %arg4: memref<1x128xf32, #tpu.memory_space<vmem>>, %arg5: memref<32x128xf32, #tpu.memory_space<vmem>>, %arg6: memref<32x128xf32, #tpu.memory_space<vmem>>, %arg7: memref<1x128xf32, #tpu.memory_space<vmem>>, %arg8: memref<32x1xf32, #tpu.memory_space<vmem>>, %arg9: memref<1x1xf32, #tpu.memory_space<vmem>>, %arg10: memref<8x1xf32, #tpu.memory_space<vmem>>, %arg11: memref<64x32xf32, #tpu.memory_space<vmem>>, %arg12: memref<64x128xf32, #tpu.memory_space<vmem>>) attributes {dimension_semantics = [#tpu.dimension_semantics<arbitrary>], iteration_bounds = array<i64: 1>, scalar_prefetch = 0 : i64, scratch_operands = 2 : i64, tpu.core_type = #tpu.core_type<tc>, window_params = [{pipeline_mode = #tpu.pipeline_mode<synchronous>, transform_indices = @transform_0, window_bounds = array<i64: 64, 8>}, {pipeline_mode = #tpu.pipeline_mode<synchronous>, transform_indices = @transform_1, window_bounds = array<i64: 8, 128>}, {pipeline_mode = #tpu.pipeline_mode<synchronous>, transform_indices = @transform_2, window_bounds = array<i64: 32, 128>}, {pipeline_mode = #tpu.pipeline_mode<synchronous>, transform_indices = @transform_3, window_bounds = array<i64: 1, 128>}, {pipeline_mode = #tpu.pipeline_mode<synchronous>, transform_indices = @transform_4, window_bounds = array<i64: 32, 128>}, {pipeline_mode = #tpu.pipeline_mode<synchronous>, transform_indices = @transform_5, window_bounds = array<i64: 32, 128>}, {pipeline_mode = #tpu.pipeline_mode<synchronous>, transform_indices = @transform_6, window_bounds = array<i64: 1, 128>}, {pipeline_mode = #tpu.pipeline_mode<synchronous>, transform_indices = @transform_7, window_bounds = array<i64: 32, 1>}, {pipeline_mode = #tpu.pipeline_mode<synchronous>, transform_indices = @transform_8, window_bounds = array<i64: 1, 1>}, {pipeline_mode = #tpu.pipeline_mode<synchronous>, transform_indices = @transform_9, window_bounds = array<i64: 8, 1>}]} {
    %c0 = arith.constant 0 : index
    %c0_0 = arith.constant 0 : index
    %0 = vector.load %arg1[%c0, %c0_0] : memref<64x8xf32, #tpu.memory_space<vmem>>, vector<64x8xf32>
    %c0_1 = arith.constant 0 : index
    %c0_2 = arith.constant 0 : index
    %1 = vector.load %arg2[%c0_1, %c0_2] : memref<8x128xf32, #tpu.memory_space<vmem>>, vector<8x128xf32>
    %cst = arith.constant dense<0.000000e+00> : vector<64x128xf32>
    %2 = tpu.matmul %0, %1, %cst {dimension_numbers = #tpu.dot_dimension_numbers<[1], [0], [0], [1], [0, 0, 1, 1], [], []>} : vector<64x8xf32>, vector<8x128xf32>, vector<64x128xf32> -> vector<64x128xf32>
    %c0_3 = arith.constant 0 : index
    %c0_4 = arith.constant 0 : index
    %3 = vector.load %arg4[%c0_3, %c0_4] : memref<1x128xf32, #tpu.memory_space<vmem>>, vector<1x128xf32>
    %4 = vector.broadcast %3 : vector<1x128xf32> to vector<64x128xf32>
    %5 = arith.addf %2, %4 : vector<64x128xf32>
    %c0_5 = arith.constant 0 : index
    %c0_6 = arith.constant 0 : index
    %6 = vector.load %arg12[%c0_5, %c0_6] : memref<64x128xf32, #tpu.memory_space<vmem>>, vector<64x128xf32>
    tpu.vector_store %arg12[%c0_5, %c0_6], %5 {strides = array<i32>} : memref<64x128xf32, #tpu.memory_space<vmem>>, vector<64x128xf32>,
    %c0_7 = arith.constant 0 : index
    %c0_8 = arith.constant 0 : index
    %7 = vector.load %arg3[%c0_7, %c0_8] : memref<32x128xf32, #tpu.memory_space<vmem>>, vector<32x128xf32>
    %cst_9 = arith.constant 0.000000e+00 : f32
    %8 = vector.broadcast %cst_9 : f32 to vector<8x32xf32>
    %cst_10 = arith.constant 0.000000e+00 : f32
    %9 = vector.broadcast %cst_10 : f32 to vector<8x32xf32>
    %c0_i32 = arith.constant 0 : i32
    %c8_i32 = arith.constant 8 : i32
    %10 = arith.muli %c0_i32, %c8_i32 : i32
    %11 = tpu.assume_multiple %10, 8 : i32
    %12 = arith.index_cast %11 : i32 to index
    %c0_11 = arith.constant 0 : index
    %13 = vector.load %arg12[%12, %c0_11] : memref<64x128xf32, #tpu.memory_space<vmem>>, vector<8x128xf32>
    %cst_12 = arith.constant dense<0.000000e+00> : vector<8x128xf32>
    %14 = tpu.matmul %8, %7, %cst_12 {dimension_numbers = #tpu.dot_dimension_numbers<[1], [0], [0], [1], [0, 0, 1, 1], [], []>} : vector<8x32xf32>, vector<32x128xf32>, vector<8x128xf32> -> vector<8x128xf32>
    %15 = arith.addf %13, %14 : vector<8x128xf32>
    %16 = vector.extract_strided_slice %15 {offsets = [0, 0], sizes = [8, 96], strides = [1, 1]} : vector<8x128xf32> to vector<8x96xf32>
    %17 = arith.negf %16 : vector<8x96xf32>
    %18 = math.exp %17 : vector<8x96xf32>
    %cst_13 = arith.constant 1.000000e+00 : f32
    %19 = vector.broadcast %cst_13 : f32 to vector<8x96xf32>
    %20 = arith.addf %19, %18 : vector<8x96xf32>
    %21 = arith.divf %19, %20 : vector<8x96xf32>
    %22 = vector.extract_strided_slice %21 {offsets = [0, 0], sizes = [8, 32], strides = [1, 1]} : vector<8x96xf32> to vector<8x32xf32>
    %23 = vector.extract_strided_slice %21 {offsets = [0, 32], sizes = [8, 32], strides = [1, 1]} : vector<8x96xf32> to vector<8x32xf32>
    %24 = vector.extract_strided_slice %21 {offsets = [0, 64], sizes = [8, 32], strides = [1, 1]} : vector<8x96xf32> to vector<8x32xf32>
    %25 = vector.extract_strided_slice %15 {offsets = [0, 96], sizes = [8, 32], strides = [1, 1]} : vector<8x128xf32> to vector<8x32xf32>
    %26 = math.tanh %25 : vector<8x32xf32>
    %27 = arith.mulf %23, %9 : vector<8x32xf32>
    %28 = arith.mulf %22, %26 : vector<8x32xf32>
    %29 = arith.addf %27, %28 : vector<8x32xf32>
    %30 = math.tanh %29 : vector<8x32xf32>
    %31 = arith.mulf %24, %30 : vector<8x32xf32>
    %32 = arith.index_cast %11 : i32 to index
    %c0_14 = arith.constant 0 : index
    %33 = vector.load %arg11[%32, %c0_14] : memref<64x32xf32, #tpu.memory_space<vmem>>, vector<8x32xf32>
    tpu.vector_store %arg11[%32, %c0_14], %31 {strides = array<i32>} : memref<64x32xf32, #tpu.memory_space<vmem>>, vector<8x32xf32>,
    %c1_i32 = arith.constant 1 : i32
    %c8_i32_15 = arith.constant 8 : i32
    %34 = arith.muli %c1_i32, %c8_i32_15 : i32
    %35 = tpu.assume_multiple %34, 8 : i32
    %36 = arith.index_cast %35 : i32 to index
    %c0_16 = arith.constant 0 : index
    %37 = vector.load %arg12[%36, %c0_16] : memref<64x128xf32, #tpu.memory_space<vmem>>, vector<8x128xf32>
    %cst_17 = arith.constant dense<0.000000e+00> : vector<8x128xf32>
    %38 = tpu.matmul %31, %7, %cst_17 {dimension_numbers = #tpu.dot_dimension_numbers<[1], [0], [0], [1], [0, 0, 1, 1], [], []>} : vector<8x32xf32>, vector<32x128xf32>, vector<8x128xf32> -> vector<8x128xf32>
    %39 = arith.addf %37, %38 : vector<8x128xf32>
    %40 = vector.extract_strided_slice %39 {offsets = [0, 0], sizes = [8, 96], strides = [1, 1]} : vector<8x128xf32> to vector<8x96xf32>
    %41 = arith.negf %40 : vector<8x96xf32>
    %42 = math.exp %41 : vector<8x96xf32>
    %cst_18 = arith.constant 1.000000e+00 : f32
    %43 = vector.broadcast %cst_18 : f32 to vector<8x96xf32>
    %44 = arith.addf %43, %42 : vector<8x96xf32>
    %45 = arith.divf %43, %44 : vector<8x96xf32>
    %46 = vector.extract_strided_slice %45 {offsets = [0, 0], sizes = [8, 32], strides = [1, 1]} : vector<8x96xf32> to vector<8x32xf32>
    %47 = vector.extract_strided_slice %45 {offsets = [0, 32], sizes = [8, 32], strides = [1, 1]} : vector<8x96xf32> to vector<8x32xf32>
    %48 = vector.extract_strided_slice %45 {offsets = [0, 64], sizes = [8, 32], strides = [1, 1]} : vector<8x96xf32> to vector<8x32xf32>
    %49 = vector.extract_strided_slice %39 {offsets = [0, 96], sizes = [8, 32], strides = [1, 1]} : vector<8x128xf32> to vector<8x32xf32>
    %50 = math.tanh %49 : vector<8x32xf32>
    %51 = arith.mulf %47, %29 : vector<8x32xf32>
    %52 = arith.mulf %46, %50 : vector<8x32xf32>
    %53 = arith.addf %51, %52 : vector<8x32xf32>
    %54 = math.tanh %53 : vector<8x32xf32>
    %55 = arith.mulf %48, %54 : vector<8x32xf32>
    %56 = arith.index_cast %35 : i32 to index
    %c0_19 = arith.constant 0 : index
    %57 = vector.load %arg11[%56, %c0_19] : memref<64x32xf32, #tpu.memory_space<vmem>>, vector<8x32xf32>
    tpu.vector_store %arg11[%56, %c0_19], %55 {strides = array<i32>} : memref<64x32xf32, #tpu.memory_space<vmem>>, vector<8x32xf32>,
    %c2_i32 = arith.constant 2 : i32
    %c8_i32_20 = arith.constant 8 : i32
    %58 = arith.muli %c2_i32, %c8_i32_20 : i32
    %59 = tpu.assume_multiple %58, 8 : i32
    %60 = arith.index_cast %59 : i32 to index
    %c0_21 = arith.constant 0 : index
    %61 = vector.load %arg12[%60, %c0_21] : memref<64x128xf32, #tpu.memory_space<vmem>>, vector<8x128xf32>
    %cst_22 = arith.constant dense<0.000000e+00> : vector<8x128xf32>
    %62 = tpu.matmul %55, %7, %cst_22 {dimension_numbers = #tpu.dot_dimension_numbers<[1], [0], [0], [1], [0, 0, 1, 1], [], []>} : vector<8x32xf32>, vector<32x128xf32>, vector<8x128xf32> -> vector<8x128xf32>
    %63 = arith.addf %61, %62 : vector<8x128xf32>
    %64 = vector.extract_strided_slice %63 {offsets = [0, 0], sizes = [8, 96], strides = [1, 1]} : vector<8x128xf32> to vector<8x96xf32>
    %65 = arith.negf %64 : vector<8x96xf32>
    %66 = math.exp %65 : vector<8x96xf32>
    %cst_23 = arith.constant 1.000000e+00 : f32
    %67 = vector.broadcast %cst_23 : f32 to vector<8x96xf32>
    %68 = arith.addf %67, %66 : vector<8x96xf32>
    %69 = arith.divf %67, %68 : vector<8x96xf32>
    %70 = vector.extract_strided_slice %69 {offsets = [0, 0], sizes = [8, 32], strides = [1, 1]} : vector<8x96xf32> to vector<8x32xf32>
    %71 = vector.extract_strided_slice %69 {offsets = [0, 32], sizes = [8, 32], strides = [1, 1]} : vector<8x96xf32> to vector<8x32xf32>
    %72 = vector.extract_strided_slice %69 {offsets = [0, 64], sizes = [8, 32], strides = [1, 1]} : vector<8x96xf32> to vector<8x32xf32>
    %73 = vector.extract_strided_slice %63 {offsets = [0, 96], sizes = [8, 32], strides = [1, 1]} : vector<8x128xf32> to vector<8x32xf32>
    %74 = math.tanh %73 : vector<8x32xf32>
    %75 = arith.mulf %71, %53 : vector<8x32xf32>
    %76 = arith.mulf %70, %74 : vector<8x32xf32>
    %77 = arith.addf %75, %76 : vector<8x32xf32>
    %78 = math.tanh %77 : vector<8x32xf32>
    %79 = arith.mulf %72, %78 : vector<8x32xf32>
    %80 = arith.index_cast %59 : i32 to index
    %c0_24 = arith.constant 0 : index
    %81 = vector.load %arg11[%80, %c0_24] : memref<64x32xf32, #tpu.memory_space<vmem>>, vector<8x32xf32>
    tpu.vector_store %arg11[%80, %c0_24], %79 {strides = array<i32>} : memref<64x32xf32, #tpu.memory_space<vmem>>, vector<8x32xf32>,
    %c3_i32 = arith.constant 3 : i32
    %c8_i32_25 = arith.constant 8 : i32
    %82 = arith.muli %c3_i32, %c8_i32_25 : i32
    %83 = tpu.assume_multiple %82, 8 : i32
    %84 = arith.index_cast %83 : i32 to index
    %c0_26 = arith.constant 0 : index
    %85 = vector.load %arg12[%84, %c0_26] : memref<64x128xf32, #tpu.memory_space<vmem>>, vector<8x128xf32>
    %cst_27 = arith.constant dense<0.000000e+00> : vector<8x128xf32>
    %86 = tpu.matmul %79, %7, %cst_27 {dimension_numbers = #tpu.dot_dimension_numbers<[1], [0], [0], [1], [0, 0, 1, 1], [], []>} : vector<8x32xf32>, vector<32x128xf32>, vector<8x128xf32> -> vector<8x128xf32>
    %87 = arith.addf %85, %86 : vector<8x128xf32>
    %88 = vector.extract_strided_slice %87 {offsets = [0, 0], sizes = [8, 96], strides = [1, 1]} : vector<8x128xf32> to vector<8x96xf32>
    %89 = arith.negf %88 : vector<8x96xf32>
    %90 = math.exp %89 : vector<8x96xf32>
    %cst_28 = arith.constant 1.000000e+00 : f32
    %91 = vector.broadcast %cst_28 : f32 to vector<8x96xf32>
    %92 = arith.addf %91, %90 : vector<8x96xf32>
    %93 = arith.divf %91, %92 : vector<8x96xf32>
    %94 = vector.extract_strided_slice %93 {offsets = [0, 0], sizes = [8, 32], strides = [1, 1]} : vector<8x96xf32> to vector<8x32xf32>
    %95 = vector.extract_strided_slice %93 {offsets = [0, 32], sizes = [8, 32], strides = [1, 1]} : vector<8x96xf32> to vector<8x32xf32>
    %96 = vector.extract_strided_slice %93 {offsets = [0, 64], sizes = [8, 32], strides = [1, 1]} : vector<8x96xf32> to vector<8x32xf32>
    %97 = vector.extract_strided_slice %87 {offsets = [0, 96], sizes = [8, 32], strides = [1, 1]} : vector<8x128xf32> to vector<8x32xf32>
    %98 = math.tanh %97 : vector<8x32xf32>
    %99 = arith.mulf %95, %77 : vector<8x32xf32>
    %100 = arith.mulf %94, %98 : vector<8x32xf32>
    %101 = arith.addf %99, %100 : vector<8x32xf32>
    %102 = math.tanh %101 : vector<8x32xf32>
    %103 = arith.mulf %96, %102 : vector<8x32xf32>
    %104 = arith.index_cast %83 : i32 to index
    %c0_29 = arith.constant 0 : index
    %105 = vector.load %arg11[%104, %c0_29] : memref<64x32xf32, #tpu.memory_space<vmem>>, vector<8x32xf32>
    tpu.vector_store %arg11[%104, %c0_29], %103 {strides = array<i32>} : memref<64x32xf32, #tpu.memory_space<vmem>>, vector<8x32xf32>,
    %c4_i32 = arith.constant 4 : i32
    %c8_i32_30 = arith.constant 8 : i32
    %106 = arith.muli %c4_i32, %c8_i32_30 : i32
    %107 = tpu.assume_multiple %106, 8 : i32
    %108 = arith.index_cast %107 : i32 to index
    %c0_31 = arith.constant 0 : index
    %109 = vector.load %arg12[%108, %c0_31] : memref<64x128xf32, #tpu.memory_space<vmem>>, vector<8x128xf32>
    %cst_32 = arith.constant dense<0.000000e+00> : vector<8x128xf32>
    %110 = tpu.matmul %103, %7, %cst_32 {dimension_numbers = #tpu.dot_dimension_numbers<[1], [0], [0], [1], [0, 0, 1, 1], [], []>} : vector<8x32xf32>, vector<32x128xf32>, vector<8x128xf32> -> vector<8x128xf32>
    %111 = arith.addf %109, %110 : vector<8x128xf32>
    %112 = vector.extract_strided_slice %111 {offsets = [0, 0], sizes = [8, 96], strides = [1, 1]} : vector<8x128xf32> to vector<8x96xf32>
    %113 = arith.negf %112 : vector<8x96xf32>
    %114 = math.exp %113 : vector<8x96xf32>
    %cst_33 = arith.constant 1.000000e+00 : f32
    %115 = vector.broadcast %cst_33 : f32 to vector<8x96xf32>
    %116 = arith.addf %115, %114 : vector<8x96xf32>
    %117 = arith.divf %115, %116 : vector<8x96xf32>
    %118 = vector.extract_strided_slice %117 {offsets = [0, 0], sizes = [8, 32], strides = [1, 1]} : vector<8x96xf32> to vector<8x32xf32>
    %119 = vector.extract_strided_slice %117 {offsets = [0, 32], sizes = [8, 32], strides = [1, 1]} : vector<8x96xf32> to vector<8x32xf32>
    %120 = vector.extract_strided_slice %117 {offsets = [0, 64], sizes = [8, 32], strides = [1, 1]} : vector<8x96xf32> to vector<8x32xf32>
    %121 = vector.extract_strided_slice %111 {offsets = [0, 96], sizes = [8, 32], strides = [1, 1]} : vector<8x128xf32> to vector<8x32xf32>
    %122 = math.tanh %121 : vector<8x32xf32>
    %123 = arith.mulf %119, %101 : vector<8x32xf32>
    %124 = arith.mulf %118, %122 : vector<8x32xf32>
    %125 = arith.addf %123, %124 : vector<8x32xf32>
    %126 = math.tanh %125 : vector<8x32xf32>
    %127 = arith.mulf %120, %126 : vector<8x32xf32>
    %128 = arith.index_cast %107 : i32 to index
    %c0_34 = arith.constant 0 : index
    %129 = vector.load %arg11[%128, %c0_34] : memref<64x32xf32, #tpu.memory_space<vmem>>, vector<8x32xf32>
    tpu.vector_store %arg11[%128, %c0_34], %127 {strides = array<i32>} : memref<64x32xf32, #tpu.memory_space<vmem>>, vector<8x32xf32>,
    %c5_i32 = arith.constant 5 : i32
    %c8_i32_35 = arith.constant 8 : i32
    %130 = arith.muli %c5_i32, %c8_i32_35 : i32
    %131 = tpu.assume_multiple %130, 8 : i32
    %132 = arith.index_cast %131 : i32 to index
    %c0_36 = arith.constant 0 : index
    %133 = vector.load %arg12[%132, %c0_36] : memref<64x128xf32, #tpu.memory_space<vmem>>, vector<8x128xf32>
    %cst_37 = arith.constant dense<0.000000e+00> : vector<8x128xf32>
    %134 = tpu.matmul %127, %7, %cst_37 {dimension_numbers = #tpu.dot_dimension_numbers<[1], [0], [0], [1], [0, 0, 1, 1], [], []>} : vector<8x32xf32>, vector<32x128xf32>, vector<8x128xf32> -> vector<8x128xf32>
    %135 = arith.addf %133, %134 : vector<8x128xf32>
    %136 = vector.extract_strided_slice %135 {offsets = [0, 0], sizes = [8, 96], strides = [1, 1]} : vector<8x128xf32> to vector<8x96xf32>
    %137 = arith.negf %136 : vector<8x96xf32>
    %138 = math.exp %137 : vector<8x96xf32>
    %cst_38 = arith.constant 1.000000e+00 : f32
    %139 = vector.broadcast %cst_38 : f32 to vector<8x96xf32>
    %140 = arith.addf %139, %138 : vector<8x96xf32>
    %141 = arith.divf %139, %140 : vector<8x96xf32>
    %142 = vector.extract_strided_slice %141 {offsets = [0, 0], sizes = [8, 32], strides = [1, 1]} : vector<8x96xf32> to vector<8x32xf32>
    %143 = vector.extract_strided_slice %141 {offsets = [0, 32], sizes = [8, 32], strides = [1, 1]} : vector<8x96xf32> to vector<8x32xf32>
    %144 = vector.extract_strided_slice %141 {offsets = [0, 64], sizes = [8, 32], strides = [1, 1]} : vector<8x96xf32> to vector<8x32xf32>
    %145 = vector.extract_strided_slice %135 {offsets = [0, 96], sizes = [8, 32], strides = [1, 1]} : vector<8x128xf32> to vector<8x32xf32>
    %146 = math.tanh %145 : vector<8x32xf32>
    %147 = arith.mulf %143, %125 : vector<8x32xf32>
    %148 = arith.mulf %142, %146 : vector<8x32xf32>
    %149 = arith.addf %147, %148 : vector<8x32xf32>
    %150 = math.tanh %149 : vector<8x32xf32>
    %151 = arith.mulf %144, %150 : vector<8x32xf32>
    %152 = arith.index_cast %131 : i32 to index
    %c0_39 = arith.constant 0 : index
    %153 = vector.load %arg11[%152, %c0_39] : memref<64x32xf32, #tpu.memory_space<vmem>>, vector<8x32xf32>
    tpu.vector_store %arg11[%152, %c0_39], %151 {strides = array<i32>} : memref<64x32xf32, #tpu.memory_space<vmem>>, vector<8x32xf32>,
    %c6_i32 = arith.constant 6 : i32
    %c8_i32_40 = arith.constant 8 : i32
    %154 = arith.muli %c6_i32, %c8_i32_40 : i32
    %155 = tpu.assume_multiple %154, 8 : i32
    %156 = arith.index_cast %155 : i32 to index
    %c0_41 = arith.constant 0 : index
    %157 = vector.load %arg12[%156, %c0_41] : memref<64x128xf32, #tpu.memory_space<vmem>>, vector<8x128xf32>
    %cst_42 = arith.constant dense<0.000000e+00> : vector<8x128xf32>
    %158 = tpu.matmul %151, %7, %cst_42 {dimension_numbers = #tpu.dot_dimension_numbers<[1], [0], [0], [1], [0, 0, 1, 1], [], []>} : vector<8x32xf32>, vector<32x128xf32>, vector<8x128xf32> -> vector<8x128xf32>
    %159 = arith.addf %157, %158 : vector<8x128xf32>
    %160 = vector.extract_strided_slice %159 {offsets = [0, 0], sizes = [8, 96], strides = [1, 1]} : vector<8x128xf32> to vector<8x96xf32>
    %161 = arith.negf %160 : vector<8x96xf32>
    %162 = math.exp %161 : vector<8x96xf32>
    %cst_43 = arith.constant 1.000000e+00 : f32
    %163 = vector.broadcast %cst_43 : f32 to vector<8x96xf32>
    %164 = arith.addf %163, %162 : vector<8x96xf32>
    %165 = arith.divf %163, %164 : vector<8x96xf32>
    %166 = vector.extract_strided_slice %165 {offsets = [0, 0], sizes = [8, 32], strides = [1, 1]} : vector<8x96xf32> to vector<8x32xf32>
    %167 = vector.extract_strided_slice %165 {offsets = [0, 32], sizes = [8, 32], strides = [1, 1]} : vector<8x96xf32> to vector<8x32xf32>
    %168 = vector.extract_strided_slice %165 {offsets = [0, 64], sizes = [8, 32], strides = [1, 1]} : vector<8x96xf32> to vector<8x32xf32>
    %169 = vector.extract_strided_slice %159 {offsets = [0, 96], sizes = [8, 32], strides = [1, 1]} : vector<8x128xf32> to vector<8x32xf32>
    %170 = math.tanh %169 : vector<8x32xf32>
    %171 = arith.mulf %167, %149 : vector<8x32xf32>
    %172 = arith.mulf %166, %170 : vector<8x32xf32>
    %173 = arith.addf %171, %172 : vector<8x32xf32>
    %174 = math.tanh %173 : vector<8x32xf32>
    %175 = arith.mulf %168, %174 : vector<8x32xf32>
    %176 = arith.index_cast %155 : i32 to index
    %c0_44 = arith.constant 0 : index
    %177 = vector.load %arg11[%176, %c0_44] : memref<64x32xf32, #tpu.memory_space<vmem>>, vector<8x32xf32>
    tpu.vector_store %arg11[%176, %c0_44], %175 {strides = array<i32>} : memref<64x32xf32, #tpu.memory_space<vmem>>, vector<8x32xf32>,
    %c7_i32 = arith.constant 7 : i32
    %c8_i32_45 = arith.constant 8 : i32
    %178 = arith.muli %c7_i32, %c8_i32_45 : i32
    %179 = tpu.assume_multiple %178, 8 : i32
    %180 = arith.index_cast %179 : i32 to index
    %c0_46 = arith.constant 0 : index
    %181 = vector.load %arg12[%180, %c0_46] : memref<64x128xf32, #tpu.memory_space<vmem>>, vector<8x128xf32>
    %cst_47 = arith.constant dense<0.000000e+00> : vector<8x128xf32>
    %182 = tpu.matmul %175, %7, %cst_47 {dimension_numbers = #tpu.dot_dimension_numbers<[1], [0], [0], [1], [0, 0, 1, 1], [], []>} : vector<8x32xf32>, vector<32x128xf32>, vector<8x128xf32> -> vector<8x128xf32>
    %183 = arith.addf %181, %182 : vector<8x128xf32>
    %184 = vector.extract_strided_slice %183 {offsets = [0, 0], sizes = [8, 96], strides = [1, 1]} : vector<8x128xf32> to vector<8x96xf32>
    %185 = arith.negf %184 : vector<8x96xf32>
    %186 = math.exp %185 : vector<8x96xf32>
    %cst_48 = arith.constant 1.000000e+00 : f32
    %187 = vector.broadcast %cst_48 : f32 to vector<8x96xf32>
    %188 = arith.addf %187, %186 : vector<8x96xf32>
    %189 = arith.divf %187, %188 : vector<8x96xf32>
    %190 = vector.extract_strided_slice %189 {offsets = [0, 0], sizes = [8, 32], strides = [1, 1]} : vector<8x96xf32> to vector<8x32xf32>
    %191 = vector.extract_strided_slice %189 {offsets = [0, 32], sizes = [8, 32], strides = [1, 1]} : vector<8x96xf32> to vector<8x32xf32>
    %192 = vector.extract_strided_slice %189 {offsets = [0, 64], sizes = [8, 32], strides = [1, 1]} : vector<8x96xf32> to vector<8x32xf32>
    %193 = vector.extract_strided_slice %183 {offsets = [0, 96], sizes = [8, 32], strides = [1, 1]} : vector<8x128xf32> to vector<8x32xf32>
    %194 = math.tanh %193 : vector<8x32xf32>
    %195 = arith.mulf %191, %173 : vector<8x32xf32>
    %196 = arith.mulf %190, %194 : vector<8x32xf32>
    %197 = arith.addf %195, %196 : vector<8x32xf32>
    %198 = math.tanh %197 : vector<8x32xf32>
    %199 = arith.mulf %192, %198 : vector<8x32xf32>
    %200 = arith.index_cast %179 : i32 to index
    %c0_49 = arith.constant 0 : index
    %201 = vector.load %arg11[%200, %c0_49] : memref<64x32xf32, #tpu.memory_space<vmem>>, vector<8x32xf32>
    tpu.vector_store %arg11[%200, %c0_49], %199 {strides = array<i32>} : memref<64x32xf32, #tpu.memory_space<vmem>>, vector<8x32xf32>,
    %c8_i32_50 = arith.constant 8 : i32
    %c0_51 = arith.constant 0 : index
    %c0_52 = arith.constant 0 : index
    %202 = vector.load %arg11[%c0_51, %c0_52] : memref<64x32xf32, #tpu.memory_space<vmem>>, vector<64x32xf32>
    %c0_53 = arith.constant 0 : index
    %c0_54 = arith.constant 0 : index
    %203 = vector.load %arg5[%c0_53, %c0_54] : memref<32x128xf32, #tpu.memory_space<vmem>>, vector<32x128xf32>
    %cst_55 = arith.constant dense<0.000000e+00> : vector<64x128xf32>
    %204 = tpu.matmul %202, %203, %cst_55 {dimension_numbers = #tpu.dot_dimension_numbers<[1], [0], [0], [1], [0, 0, 1, 1], [], []>} : vector<64x32xf32>, vector<32x128xf32>, vector<64x128xf32> -> vector<64x128xf32>
    %c0_56 = arith.constant 0 : index
    %c0_57 = arith.constant 0 : index
    %205 = vector.load %arg7[%c0_56, %c0_57] : memref<1x128xf32, #tpu.memory_space<vmem>>, vector<1x128xf32>
    %206 = vector.broadcast %205 : vector<1x128xf32> to vector<64x128xf32>
    %207 = arith.addf %204, %206 : vector<64x128xf32>
    %c0_58 = arith.constant 0 : index
    %c0_59 = arith.constant 0 : index
    %208 = vector.load %arg12[%c0_58, %c0_59] : memref<64x128xf32, #tpu.memory_space<vmem>>, vector<64x128xf32>
    tpu.vector_store %arg12[%c0_58, %c0_59], %207 {strides = array<i32>} : memref<64x128xf32, #tpu.memory_space<vmem>>, vector<64x128xf32>,
    %c0_60 = arith.constant 0 : index
    %c0_61 = arith.constant 0 : index
    %209 = vector.load %arg6[%c0_60, %c0_61] : memref<32x128xf32, #tpu.memory_space<vmem>>, vector<32x128xf32>
    %cst_62 = arith.constant 0.000000e+00 : f32
    %210 = vector.broadcast %cst_62 : f32 to vector<8x32xf32>
    %cst_63 = arith.constant 0.000000e+00 : f32
    %211 = vector.broadcast %cst_63 : f32 to vector<8x32xf32>
    %c0_i32_64 = arith.constant 0 : i32
    %c8_i32_65 = arith.constant 8 : i32
    %212 = arith.muli %c0_i32_64, %c8_i32_65 : i32
    %213 = tpu.assume_multiple %212, 8 : i32
    %214 = arith.index_cast %213 : i32 to index
    %c0_66 = arith.constant 0 : index
    %215 = vector.load %arg12[%214, %c0_66] : memref<64x128xf32, #tpu.memory_space<vmem>>, vector<8x128xf32>
    %cst_67 = arith.constant dense<0.000000e+00> : vector<8x128xf32>
    %216 = tpu.matmul %210, %209, %cst_67 {dimension_numbers = #tpu.dot_dimension_numbers<[1], [0], [0], [1], [0, 0, 1, 1], [], []>} : vector<8x32xf32>, vector<32x128xf32>, vector<8x128xf32> -> vector<8x128xf32>
    %217 = arith.addf %215, %216 : vector<8x128xf32>
    %218 = vector.extract_strided_slice %217 {offsets = [0, 0], sizes = [8, 96], strides = [1, 1]} : vector<8x128xf32> to vector<8x96xf32>
    %219 = arith.negf %218 : vector<8x96xf32>
    %220 = math.exp %219 : vector<8x96xf32>
    %cst_68 = arith.constant 1.000000e+00 : f32
    %221 = vector.broadcast %cst_68 : f32 to vector<8x96xf32>
    %222 = arith.addf %221, %220 : vector<8x96xf32>
    %223 = arith.divf %221, %222 : vector<8x96xf32>
    %224 = vector.extract_strided_slice %223 {offsets = [0, 0], sizes = [8, 32], strides = [1, 1]} : vector<8x96xf32> to vector<8x32xf32>
    %225 = vector.extract_strided_slice %223 {offsets = [0, 32], sizes = [8, 32], strides = [1, 1]} : vector<8x96xf32> to vector<8x32xf32>
    %226 = vector.extract_strided_slice %223 {offsets = [0, 64], sizes = [8, 32], strides = [1, 1]} : vector<8x96xf32> to vector<8x32xf32>
    %227 = vector.extract_strided_slice %217 {offsets = [0, 96], sizes = [8, 32], strides = [1, 1]} : vector<8x128xf32> to vector<8x32xf32>
    %228 = math.tanh %227 : vector<8x32xf32>
    %229 = arith.mulf %225, %211 : vector<8x32xf32>
    %230 = arith.mulf %224, %228 : vector<8x32xf32>
    %231 = arith.addf %229, %230 : vector<8x32xf32>
    %232 = math.tanh %231 : vector<8x32xf32>
    %233 = arith.mulf %226, %232 : vector<8x32xf32>
    %c1_i32_69 = arith.constant 1 : i32
    %c8_i32_70 = arith.constant 8 : i32
    %234 = arith.muli %c1_i32_69, %c8_i32_70 : i32
    %235 = tpu.assume_multiple %234, 8 : i32
    %236 = arith.index_cast %235 : i32 to index
    %c0_71 = arith.constant 0 : index
    %237 = vector.load %arg12[%236, %c0_71] : memref<64x128xf32, #tpu.memory_space<vmem>>, vector<8x128xf32>
    %cst_72 = arith.constant dense<0.000000e+00> : vector<8x128xf32>
    %238 = tpu.matmul %233, %209, %cst_72 {dimension_numbers = #tpu.dot_dimension_numbers<[1], [0], [0], [1], [0, 0, 1, 1], [], []>} : vector<8x32xf32>, vector<32x128xf32>, vector<8x128xf32> -> vector<8x128xf32>
    %239 = arith.addf %237, %238 : vector<8x128xf32>
    %240 = vector.extract_strided_slice %239 {offsets = [0, 0], sizes = [8, 96], strides = [1, 1]} : vector<8x128xf32> to vector<8x96xf32>
    %241 = arith.negf %240 : vector<8x96xf32>
    %242 = math.exp %241 : vector<8x96xf32>
    %cst_73 = arith.constant 1.000000e+00 : f32
    %243 = vector.broadcast %cst_73 : f32 to vector<8x96xf32>
    %244 = arith.addf %243, %242 : vector<8x96xf32>
    %245 = arith.divf %243, %244 : vector<8x96xf32>
    %246 = vector.extract_strided_slice %245 {offsets = [0, 0], sizes = [8, 32], strides = [1, 1]} : vector<8x96xf32> to vector<8x32xf32>
    %247 = vector.extract_strided_slice %245 {offsets = [0, 32], sizes = [8, 32], strides = [1, 1]} : vector<8x96xf32> to vector<8x32xf32>
    %248 = vector.extract_strided_slice %245 {offsets = [0, 64], sizes = [8, 32], strides = [1, 1]} : vector<8x96xf32> to vector<8x32xf32>
    %249 = vector.extract_strided_slice %239 {offsets = [0, 96], sizes = [8, 32], strides = [1, 1]} : vector<8x128xf32> to vector<8x32xf32>
    %250 = math.tanh %249 : vector<8x32xf32>
    %251 = arith.mulf %247, %231 : vector<8x32xf32>
    %252 = arith.mulf %246, %250 : vector<8x32xf32>
    %253 = arith.addf %251, %252 : vector<8x32xf32>
    %254 = math.tanh %253 : vector<8x32xf32>
    %255 = arith.mulf %248, %254 : vector<8x32xf32>
    %c2_i32_74 = arith.constant 2 : i32
    %c8_i32_75 = arith.constant 8 : i32
    %256 = arith.muli %c2_i32_74, %c8_i32_75 : i32
    %257 = tpu.assume_multiple %256, 8 : i32
    %258 = arith.index_cast %257 : i32 to index
    %c0_76 = arith.constant 0 : index
    %259 = vector.load %arg12[%258, %c0_76] : memref<64x128xf32, #tpu.memory_space<vmem>>, vector<8x128xf32>
    %cst_77 = arith.constant dense<0.000000e+00> : vector<8x128xf32>
    %260 = tpu.matmul %255, %209, %cst_77 {dimension_numbers = #tpu.dot_dimension_numbers<[1], [0], [0], [1], [0, 0, 1, 1], [], []>} : vector<8x32xf32>, vector<32x128xf32>, vector<8x128xf32> -> vector<8x128xf32>
    %261 = arith.addf %259, %260 : vector<8x128xf32>
    %262 = vector.extract_strided_slice %261 {offsets = [0, 0], sizes = [8, 96], strides = [1, 1]} : vector<8x128xf32> to vector<8x96xf32>
    %263 = arith.negf %262 : vector<8x96xf32>
    %264 = math.exp %263 : vector<8x96xf32>
    %cst_78 = arith.constant 1.000000e+00 : f32
    %265 = vector.broadcast %cst_78 : f32 to vector<8x96xf32>
    %266 = arith.addf %265, %264 : vector<8x96xf32>
    %267 = arith.divf %265, %266 : vector<8x96xf32>
    %268 = vector.extract_strided_slice %267 {offsets = [0, 0], sizes = [8, 32], strides = [1, 1]} : vector<8x96xf32> to vector<8x32xf32>
    %269 = vector.extract_strided_slice %267 {offsets = [0, 32], sizes = [8, 32], strides = [1, 1]} : vector<8x96xf32> to vector<8x32xf32>
    %270 = vector.extract_strided_slice %267 {offsets = [0, 64], sizes = [8, 32], strides = [1, 1]} : vector<8x96xf32> to vector<8x32xf32>
    %271 = vector.extract_strided_slice %261 {offsets = [0, 96], sizes = [8, 32], strides = [1, 1]} : vector<8x128xf32> to vector<8x32xf32>
    %272 = math.tanh %271 : vector<8x32xf32>
    %273 = arith.mulf %269, %253 : vector<8x32xf32>
    %274 = arith.mulf %268, %272 : vector<8x32xf32>
    %275 = arith.addf %273, %274 : vector<8x32xf32>
    %276 = math.tanh %275 : vector<8x32xf32>
    %277 = arith.mulf %270, %276 : vector<8x32xf32>
    %c3_i32_79 = arith.constant 3 : i32
    %c8_i32_80 = arith.constant 8 : i32
    %278 = arith.muli %c3_i32_79, %c8_i32_80 : i32
    %279 = tpu.assume_multiple %278, 8 : i32
    %280 = arith.index_cast %279 : i32 to index
    %c0_81 = arith.constant 0 : index
    %281 = vector.load %arg12[%280, %c0_81] : memref<64x128xf32, #tpu.memory_space<vmem>>, vector<8x128xf32>
    %cst_82 = arith.constant dense<0.000000e+00> : vector<8x128xf32>
    %282 = tpu.matmul %277, %209, %cst_82 {dimension_numbers = #tpu.dot_dimension_numbers<[1], [0], [0], [1], [0, 0, 1, 1], [], []>} : vector<8x32xf32>, vector<32x128xf32>, vector<8x128xf32> -> vector<8x128xf32>
    %283 = arith.addf %281, %282 : vector<8x128xf32>
    %284 = vector.extract_strided_slice %283 {offsets = [0, 0], sizes = [8, 96], strides = [1, 1]} : vector<8x128xf32> to vector<8x96xf32>
    %285 = arith.negf %284 : vector<8x96xf32>
    %286 = math.exp %285 : vector<8x96xf32>
    %cst_83 = arith.constant 1.000000e+00 : f32
    %287 = vector.broadcast %cst_83 : f32 to vector<8x96xf32>
    %288 = arith.addf %287, %286 : vector<8x96xf32>
    %289 = arith.divf %287, %288 : vector<8x96xf32>
    %290 = vector.extract_strided_slice %289 {offsets = [0, 0], sizes = [8, 32], strides = [1, 1]} : vector<8x96xf32> to vector<8x32xf32>
    %291 = vector.extract_strided_slice %289 {offsets = [0, 32], sizes = [8, 32], strides = [1, 1]} : vector<8x96xf32> to vector<8x32xf32>
    %292 = vector.extract_strided_slice %289 {offsets = [0, 64], sizes = [8, 32], strides = [1, 1]} : vector<8x96xf32> to vector<8x32xf32>
    %293 = vector.extract_strided_slice %283 {offsets = [0, 96], sizes = [8, 32], strides = [1, 1]} : vector<8x128xf32> to vector<8x32xf32>
    %294 = math.tanh %293 : vector<8x32xf32>
    %295 = arith.mulf %291, %275 : vector<8x32xf32>
    %296 = arith.mulf %290, %294 : vector<8x32xf32>
    %297 = arith.addf %295, %296 : vector<8x32xf32>
    %298 = math.tanh %297 : vector<8x32xf32>
    %299 = arith.mulf %292, %298 : vector<8x32xf32>
    %c4_i32_84 = arith.constant 4 : i32
    %c8_i32_85 = arith.constant 8 : i32
    %300 = arith.muli %c4_i32_84, %c8_i32_85 : i32
    %301 = tpu.assume_multiple %300, 8 : i32
    %302 = arith.index_cast %301 : i32 to index
    %c0_86 = arith.constant 0 : index
    %303 = vector.load %arg12[%302, %c0_86] : memref<64x128xf32, #tpu.memory_space<vmem>>, vector<8x128xf32>
    %cst_87 = arith.constant dense<0.000000e+00> : vector<8x128xf32>
    %304 = tpu.matmul %299, %209, %cst_87 {dimension_numbers = #tpu.dot_dimension_numbers<[1], [0], [0], [1], [0, 0, 1, 1], [], []>} : vector<8x32xf32>, vector<32x128xf32>, vector<8x128xf32> -> vector<8x128xf32>
    %305 = arith.addf %303, %304 : vector<8x128xf32>
    %306 = vector.extract_strided_slice %305 {offsets = [0, 0], sizes = [8, 96], strides = [1, 1]} : vector<8x128xf32> to vector<8x96xf32>
    %307 = arith.negf %306 : vector<8x96xf32>
    %308 = math.exp %307 : vector<8x96xf32>
    %cst_88 = arith.constant 1.000000e+00 : f32
    %309 = vector.broadcast %cst_88 : f32 to vector<8x96xf32>
    %310 = arith.addf %309, %308 : vector<8x96xf32>
    %311 = arith.divf %309, %310 : vector<8x96xf32>
    %312 = vector.extract_strided_slice %311 {offsets = [0, 0], sizes = [8, 32], strides = [1, 1]} : vector<8x96xf32> to vector<8x32xf32>
    %313 = vector.extract_strided_slice %311 {offsets = [0, 32], sizes = [8, 32], strides = [1, 1]} : vector<8x96xf32> to vector<8x32xf32>
    %314 = vector.extract_strided_slice %311 {offsets = [0, 64], sizes = [8, 32], strides = [1, 1]} : vector<8x96xf32> to vector<8x32xf32>
    %315 = vector.extract_strided_slice %305 {offsets = [0, 96], sizes = [8, 32], strides = [1, 1]} : vector<8x128xf32> to vector<8x32xf32>
    %316 = math.tanh %315 : vector<8x32xf32>
    %317 = arith.mulf %313, %297 : vector<8x32xf32>
    %318 = arith.mulf %312, %316 : vector<8x32xf32>
    %319 = arith.addf %317, %318 : vector<8x32xf32>
    %320 = math.tanh %319 : vector<8x32xf32>
    %321 = arith.mulf %314, %320 : vector<8x32xf32>
    %c5_i32_89 = arith.constant 5 : i32
    %c8_i32_90 = arith.constant 8 : i32
    %322 = arith.muli %c5_i32_89, %c8_i32_90 : i32
    %323 = tpu.assume_multiple %322, 8 : i32
    %324 = arith.index_cast %323 : i32 to index
    %c0_91 = arith.constant 0 : index
    %325 = vector.load %arg12[%324, %c0_91] : memref<64x128xf32, #tpu.memory_space<vmem>>, vector<8x128xf32>
    %cst_92 = arith.constant dense<0.000000e+00> : vector<8x128xf32>
    %326 = tpu.matmul %321, %209, %cst_92 {dimension_numbers = #tpu.dot_dimension_numbers<[1], [0], [0], [1], [0, 0, 1, 1], [], []>} : vector<8x32xf32>, vector<32x128xf32>, vector<8x128xf32> -> vector<8x128xf32>
    %327 = arith.addf %325, %326 : vector<8x128xf32>
    %328 = vector.extract_strided_slice %327 {offsets = [0, 0], sizes = [8, 96], strides = [1, 1]} : vector<8x128xf32> to vector<8x96xf32>
    %329 = arith.negf %328 : vector<8x96xf32>
    %330 = math.exp %329 : vector<8x96xf32>
    %cst_93 = arith.constant 1.000000e+00 : f32
    %331 = vector.broadcast %cst_93 : f32 to vector<8x96xf32>
    %332 = arith.addf %331, %330 : vector<8x96xf32>
    %333 = arith.divf %331, %332 : vector<8x96xf32>
    %334 = vector.extract_strided_slice %333 {offsets = [0, 0], sizes = [8, 32], strides = [1, 1]} : vector<8x96xf32> to vector<8x32xf32>
    %335 = vector.extract_strided_slice %333 {offsets = [0, 32], sizes = [8, 32], strides = [1, 1]} : vector<8x96xf32> to vector<8x32xf32>
    %336 = vector.extract_strided_slice %333 {offsets = [0, 64], sizes = [8, 32], strides = [1, 1]} : vector<8x96xf32> to vector<8x32xf32>
    %337 = vector.extract_strided_slice %327 {offsets = [0, 96], sizes = [8, 32], strides = [1, 1]} : vector<8x128xf32> to vector<8x32xf32>
    %338 = math.tanh %337 : vector<8x32xf32>
    %339 = arith.mulf %335, %319 : vector<8x32xf32>
    %340 = arith.mulf %334, %338 : vector<8x32xf32>
    %341 = arith.addf %339, %340 : vector<8x32xf32>
    %342 = math.tanh %341 : vector<8x32xf32>
    %343 = arith.mulf %336, %342 : vector<8x32xf32>
    %c6_i32_94 = arith.constant 6 : i32
    %c8_i32_95 = arith.constant 8 : i32
    %344 = arith.muli %c6_i32_94, %c8_i32_95 : i32
    %345 = tpu.assume_multiple %344, 8 : i32
    %346 = arith.index_cast %345 : i32 to index
    %c0_96 = arith.constant 0 : index
    %347 = vector.load %arg12[%346, %c0_96] : memref<64x128xf32, #tpu.memory_space<vmem>>, vector<8x128xf32>
    %cst_97 = arith.constant dense<0.000000e+00> : vector<8x128xf32>
    %348 = tpu.matmul %343, %209, %cst_97 {dimension_numbers = #tpu.dot_dimension_numbers<[1], [0], [0], [1], [0, 0, 1, 1], [], []>} : vector<8x32xf32>, vector<32x128xf32>, vector<8x128xf32> -> vector<8x128xf32>
    %349 = arith.addf %347, %348 : vector<8x128xf32>
    %350 = vector.extract_strided_slice %349 {offsets = [0, 0], sizes = [8, 96], strides = [1, 1]} : vector<8x128xf32> to vector<8x96xf32>
    %351 = arith.negf %350 : vector<8x96xf32>
    %352 = math.exp %351 : vector<8x96xf32>
    %cst_98 = arith.constant 1.000000e+00 : f32
    %353 = vector.broadcast %cst_98 : f32 to vector<8x96xf32>
    %354 = arith.addf %353, %352 : vector<8x96xf32>
    %355 = arith.divf %353, %354 : vector<8x96xf32>
    %356 = vector.extract_strided_slice %355 {offsets = [0, 0], sizes = [8, 32], strides = [1, 1]} : vector<8x96xf32> to vector<8x32xf32>
    %357 = vector.extract_strided_slice %355 {offsets = [0, 32], sizes = [8, 32], strides = [1, 1]} : vector<8x96xf32> to vector<8x32xf32>
    %358 = vector.extract_strided_slice %355 {offsets = [0, 64], sizes = [8, 32], strides = [1, 1]} : vector<8x96xf32> to vector<8x32xf32>
    %359 = vector.extract_strided_slice %349 {offsets = [0, 96], sizes = [8, 32], strides = [1, 1]} : vector<8x128xf32> to vector<8x32xf32>
    %360 = math.tanh %359 : vector<8x32xf32>
    %361 = arith.mulf %357, %341 : vector<8x32xf32>
    %362 = arith.mulf %356, %360 : vector<8x32xf32>
    %363 = arith.addf %361, %362 : vector<8x32xf32>
    %364 = math.tanh %363 : vector<8x32xf32>
    %365 = arith.mulf %358, %364 : vector<8x32xf32>
    %c7_i32_99 = arith.constant 7 : i32
    %c8_i32_100 = arith.constant 8 : i32
    %366 = arith.muli %c7_i32_99, %c8_i32_100 : i32
    %367 = tpu.assume_multiple %366, 8 : i32
    %368 = arith.index_cast %367 : i32 to index
    %c0_101 = arith.constant 0 : index
    %369 = vector.load %arg12[%368, %c0_101] : memref<64x128xf32, #tpu.memory_space<vmem>>, vector<8x128xf32>
    %cst_102 = arith.constant dense<0.000000e+00> : vector<8x128xf32>
    %370 = tpu.matmul %365, %209, %cst_102 {dimension_numbers = #tpu.dot_dimension_numbers<[1], [0], [0], [1], [0, 0, 1, 1], [], []>} : vector<8x32xf32>, vector<32x128xf32>, vector<8x128xf32> -> vector<8x128xf32>
    %371 = arith.addf %369, %370 : vector<8x128xf32>
    %372 = vector.extract_strided_slice %371 {offsets = [0, 0], sizes = [8, 96], strides = [1, 1]} : vector<8x128xf32> to vector<8x96xf32>
    %373 = arith.negf %372 : vector<8x96xf32>
    %374 = math.exp %373 : vector<8x96xf32>
    %cst_103 = arith.constant 1.000000e+00 : f32
    %375 = vector.broadcast %cst_103 : f32 to vector<8x96xf32>
    %376 = arith.addf %375, %374 : vector<8x96xf32>
    %377 = arith.divf %375, %376 : vector<8x96xf32>
    %378 = vector.extract_strided_slice %377 {offsets = [0, 0], sizes = [8, 32], strides = [1, 1]} : vector<8x96xf32> to vector<8x32xf32>
    %379 = vector.extract_strided_slice %377 {offsets = [0, 32], sizes = [8, 32], strides = [1, 1]} : vector<8x96xf32> to vector<8x32xf32>
    %380 = vector.extract_strided_slice %377 {offsets = [0, 64], sizes = [8, 32], strides = [1, 1]} : vector<8x96xf32> to vector<8x32xf32>
    %381 = vector.extract_strided_slice %371 {offsets = [0, 96], sizes = [8, 32], strides = [1, 1]} : vector<8x128xf32> to vector<8x32xf32>
    %382 = math.tanh %381 : vector<8x32xf32>
    %383 = arith.mulf %379, %363 : vector<8x32xf32>
    %384 = arith.mulf %378, %382 : vector<8x32xf32>
    %385 = arith.addf %383, %384 : vector<8x32xf32>
    %386 = math.tanh %385 : vector<8x32xf32>
    %387 = arith.mulf %380, %386 : vector<8x32xf32>
    %c8_i32_104 = arith.constant 8 : i32
    %c0_105 = arith.constant 0 : index
    %c0_106 = arith.constant 0 : index
    %388 = vector.load %arg8[%c0_105, %c0_106] : memref<32x1xf32, #tpu.memory_space<vmem>>, vector<32x1xf32>
    %cst_107 = arith.constant dense<0.000000e+00> : vector<8x1xf32>
    %389 = tpu.matmul %387, %388, %cst_107 {dimension_numbers = #tpu.dot_dimension_numbers<[1], [0], [0], [1], [0, 0, 1, 1], [], []>} : vector<8x32xf32>, vector<32x1xf32>, vector<8x1xf32> -> vector<8x1xf32>
    %c0_108 = arith.constant 0 : index
    %c0_109 = arith.constant 0 : index
    %390 = vector.load %arg9[%c0_108, %c0_109] : memref<1x1xf32, #tpu.memory_space<vmem>>, vector<1x1xf32>
    %391 = vector.broadcast %390 : vector<1x1xf32> to vector<8x1xf32>
    %392 = arith.addf %389, %391 : vector<8x1xf32>
    %c0_110 = arith.constant 0 : index
    %c0_111 = arith.constant 0 : index
    %393 = vector.load %arg10[%c0_110, %c0_111] : memref<8x1xf32, #tpu.memory_space<vmem>>, vector<8x1xf32>
    tpu.vector_store %arg10[%c0_110, %c0_111], %392 {strides = array<i32>} : memref<8x1xf32, #tpu.memory_space<vmem>>, vector<8x1xf32>,
    return
  }
  func.func @transform_0(%arg0: i32) -> (i32, i32) {
    %c0_i32 = arith.constant 0 : i32
    %c0_i32_0 = arith.constant 0 : i32
    %c0_i32_1 = arith.constant 0 : i32
    return %c0_i32, %c0_i32_0 : i32, i32
  }
  func.func @transform_1(%arg0: i32) -> (i32, i32) {
    %c0_i32 = arith.constant 0 : i32
    %c0_i32_0 = arith.constant 0 : i32
    %c0_i32_1 = arith.constant 0 : i32
    return %c0_i32, %c0_i32_0 : i32, i32
  }
  func.func @transform_2(%arg0: i32) -> (i32, i32) {
    %c0_i32 = arith.constant 0 : i32
    %c0_i32_0 = arith.constant 0 : i32
    %c0_i32_1 = arith.constant 0 : i32
    return %c0_i32, %c0_i32_0 : i32, i32
  }
  func.func @transform_3(%arg0: i32) -> (i32, i32) {
    %c0_i32 = arith.constant 0 : i32
    %c0_i32_0 = arith.constant 0 : i32
    %c0_i32_1 = arith.constant 0 : i32
    return %c0_i32, %c0_i32_0 : i32, i32
  }
  func.func @transform_4(%arg0: i32) -> (i32, i32) {
    %c0_i32 = arith.constant 0 : i32
    %c0_i32_0 = arith.constant 0 : i32
    %c0_i32_1 = arith.constant 0 : i32
    return %c0_i32, %c0_i32_0 : i32, i32
  }
  func.func @transform_5(%arg0: i32) -> (i32, i32) {
    %c0_i32 = arith.constant 0 : i32
    %c0_i32_0 = arith.constant 0 : i32
    %c0_i32_1 = arith.constant 0 : i32
    return %c0_i32, %c0_i32_0 : i32, i32
  }
  func.func @transform_6(%arg0: i32) -> (i32, i32) {
    %c0_i32 = arith.constant 0 : i32
    %c0_i32_0 = arith.constant 0 : i32
    %c0_i32_1 = arith.constant 0 : i32
    return %c0_i32, %c0_i32_0 : i32, i32
  }
  func.func @transform_7(%arg0: i32) -> (i32, i32) {
    %c0_i32 = arith.constant 0 : i32
    %c0_i32_0 = arith.constant 0 : i32
    %c0_i32_1 = arith.constant 0 : i32
    return %c0_i32, %c0_i32_0 : i32, i32
  }
  func.func @transform_8(%arg0: i32) -> (i32, i32) {
    %c0_i32 = arith.constant 0 : i32
    %c0_i32_0 = arith.constant 0 : i32
    %c0_i32_1 = arith.constant 0 : i32
    return %c0_i32, %c0_i32_0 : i32, i32
  }
  func.func @transform_9(%arg0: i32) -> (i32, i32) {
    %c0_i32 = arith.constant 0 : i32
    %c0_i32_0 = arith.constant 0 : i32
    %c0_i32_1 = arith.constant 0 : i32
    return %c0_i32, %c0_i32_0 : i32, i32
  }
}

</mosaic_0001>

<bundles_post_ra>
// kernel: tpu_custom_call.1
= control target key start
LH: loop header
LB: loop body
LE: loop exit
PB: predicated region body
PF: predicated region fallthrough
CT: control target
= control target key end

     0   :  { %s3112_s0 = inlined_call_operand.vmem [shape: f32[64,8], index: 0, kind: input, shape index: {}]   ;;  %s3113_s1 = inlined_call_operand.hbm [shape: f32[8,128], index: 1, kind: input, shape index: {}]   ;;  %s3114_s2 = inlined_call_operand.vmem [shape: f32[32,128], index: 2, kind: input, shape index: {}]   ;;  %s3115_s3 = inlined_call_operand.vmem [shape: f32[1,128], index: 3, kind: input, shape index: {}]   ;;  %s3116_s4 = inlined_call_operand.vmem [shape: f32[32,128], index: 4, kind: input, shape index: {}]   ;;  %s3117_s5 = inlined_call_operand.vmem [shape: f32[32,128], index: 5, kind: input, shape index: {}]   ;;  %s3118_s6 = inlined_call_operand.vmem [shape: f32[1,128], index: 6, kind: input, shape index: {}]   ;;  %s3119_s7 = inlined_call_operand.vmem [shape: f32[32,1], index: 7, kind: input, shape index: {}]   ;;  %s3120_s8 = inlined_call_operand.<no memory space> [shape: f32[1,1], index: 8, kind: input, shape index: {}]   ;;  %s3121_s9 = inlined_call_operand.vmem [shape: f32[8,1], index: 9, kind: output, shape index: {}]  }
   0x1   :  { %v14_v0 = vstv %s3120_s8 }
   0x2   :  { %15 = vst [vmem:[#allocation4] sm:$0x1] %v14_v0 }
   0x3   :  { %16 = vsyncpa [#allocation6], 0  ;;  %s2632_s11 = smov [#allocation5]  }
   0x4   :  { %s25_s12 = sshll.u32 %s2632_s11, 4  ;;  %s26_s12 = int_to_ptr.vmem [resolvable:$true] %s25_s12 }
   0x5   :  { %s2618_s13 = scalar_lea.vmem %s26_s12, 128  ;;  %p2623_p1 = scmp.lt.s32.totalorder %s26_s12, %s26_s12 }
   0x6   :  { %p2619_p0 = scmp.ne.s32.totalorder %s26_s12, %s2618_s13  ;;  %p2624_p2 = scmp.lt.s32.totalorder %s2618_s13, %s2618_s13 }
   0x8   :  { %p2625_p3 = por %p2624_p2, %p2623_p1 }
   0xa   :  { %p2626_p4 = pnand %p2625_p3, %p2619_p0 }
   0xc   :  { %2629 = shalt.err (!%p2626_p4)
}
   0xd   :  { %28 = dma.hbm_to_vmem [thread:$0]  %s3113_s1, 128, %s26_s12, [#allocation6]  }
   0xe   :  { %2630 = dma.done.wait [#allocation6], 128  }
   0xf   :  { %2631 = vsyncadd [#allocation6], 4294967168  ;;  %v2633_v1 = vmov 0.0   ;;  %vm2634_vm0 = vmmov 0   ;;  %vm62_vm1 = vcmask 64512   ;;  %v54_v2 = vld [vmem:[#allocation5] sm:$0xff] }
  0x10   :  { %2270 = vmatprep.subr.mxu1 %v2633_v1  ;;  %2278 = vmatprep.mubr.msk.f32.mxu1 %vm2634_vm0, %v2633_v1  ;;  %v2699_v3 = vld [vmem:[%s3114_s2 + $0x18] sm:$0xff]  ;;  %v46_v4 = vld [vmem:[%s3112_s0] sm:$0xff]  ;;  %v47_v5 = vld [vmem:[%s3112_s0 + $0x8] sm:$0xff]  ;;  %s2635_s27 = smov 32   ;;  %vm205_vm2 = vcmask 261120   ;;  %vm2093_vm3 = vcmask 7168  }
  0x11   :  { %2256 = vmatprep.subr.mxu0 %v54_v2  ;;  %2271 = vmatpush3.msra.mxu1 %v2699_v3  ;;  %v2711_v6 = vld [vmem:[%s3114_s2 + $0x10] sm:$0xff]  ;;  %v2719_v7 = vld [vmem:[%s3114_s2 + $0x8] sm:$0xff]  ;;  %v2727_v8 = vld [vmem:[%s3114_s2] sm:$0xff] }
  0x12   :  { %2257 = vmatpush3.msra.mxu0 %v54_v2  ;;  %2258 = vmatprep.mubr.msk.f32.mxu0 %vm62_vm1, %v46_v4  ;;  %v2755_v10 = vld [vmem:[%s3115_s3] ss:$0 sm:$0xff]  ;;  %s2636_s3 = smov 64   ;;  %v48_v44 = vld [vmem:[%s3112_s0 + $0x10] sm:$0xff]  ;;  %v49_v45 = vld [vmem:[%s3112_s0 + $0x18] sm:$0xff] }
  0x13   :  { %2272 = vmatprep.subr.mxu1 %v2633_v1  ;;  %2259 = vmatmul.mubr.msk.f32.vlgmr.msra.gmra.mxu0 %vm62_vm1, %v47_v5  ;;  %v50_v46 = vld [vmem:[%s3112_s0 + $0x20] sm:$0xff]  ;;  %v51_v47 = vld [vmem:[%s3112_s0 + $0x28] sm:$0xff]  ;;  %v52_v48 = vld [vmem:[%s3112_s0 + $0x30] sm:$0xff] }
  0x14   :  { %2273 = vmatpush3.msra.mxu1 %v2711_v6  ;;  %2292 = vmatprep.subr.mxu0 %v2633_v1  ;;  %v53_v49 = vld [vmem:[%s3112_s0 + $0x38] sm:$0xff] }
  0x15   :  { %2274 = vmatprep.subr.mxu1 %v2633_v1  ;;  %2293 = vmatpush3.msra.mxu0 %v2699_v3 }
  0x16   :  { %2275 = vmatpush3.msra.mxu1 %v2719_v7  ;;  %2294 = vmatprep.subr.mxu0 %v2633_v1 }
  0x17   :  { %2276 = vmatprep.subr.mxu1 %v2633_v1  ;;  %2295 = vmatpush3.msra.mxu0 %v2711_v6 }
  0x18   :  { %2277 = vmatpush3.msra.mxu1 %v2727_v8  ;;  %2296 = vmatprep.subr.mxu0 %v2633_v1 }
  0x19   :  { %2279 = vmatmul.mubr.f32.vlgmr.msra.gmra.mxu1 %v2633_v1  ;;  %2281 = vmatprep.subr.mxu1 %v2633_v1 }
  0x1a   :  { %2282 = vmatpush3.msra.mxu1 %v2699_v3  ;;  %2289 = vmatprep.mubr.msk.f32.mxu1 %vm2634_vm0, %v2633_v1 }
  0x1b   :  { %2283 = vmatprep.subr.mxu1 %v2633_v1  ;;  %2297 = vmatpush3.msra.mxu0 %v2719_v7 }
  0x1c   :  { %2284 = vmatpush3.msra.mxu1 %v2711_v6  ;;  %2298 = vmatprep.subr.mxu0 %v2633_v1 }
  0x1d   :  { %2285 = vmatprep.subr.mxu1 %v2633_v1  ;;  %2299 = vmatpush3.msra.mxu0 %v2727_v8 }
  0x1e   :  { %2286 = vmatpush3.msra.mxu1 %v2719_v7  ;;  %2314 = vmatprep.subr.mxu0 %v2633_v1 }
  0x1f   :  { %2287 = vmatprep.subr.mxu1 %v2633_v1  ;;  %2261 = vmatprep.mubr.msk.f32.mxu0 %vm62_vm1, %v48_v44 }
  0x20   :  { %2288 = vmatpush3.msra.mxu1 %v2727_v8  ;;  %2262 = vmatmul.mubr.msk.f32.gmra.mxu0 %vm62_vm1, %v49_v45 }
  0x21   :  { %2303 = vmatprep.subr.mxu1 %v2633_v1  ;;  %2264 = vmatprep.mubr.msk.f32.mxu0 %vm62_vm1, %v50_v46 }
  0x24   :  { %2265 = vmatmul.mubr.msk.f32.gmra.mxu0 %vm62_vm1, %v51_v47 }
  0x25   :  { %2267 = vmatprep.mubr.msk.f32.mxu0 %vm62_vm1, %v52_v48 }
  0x28   :  { %2268 = vmatmul.mubr.msk.f32.gmra.mxu0 %vm62_vm1, %v53_v49 }
  0x29   :  { %2300 = vmatprep.mubr.msk.f32.mxu0 %vm2634_vm0, %v2633_v1 }
  0xd3   :  { %v2260_v9 = vpop.f32.mrf.mxu0 }
  0xd4   :  { %v159_v30 = vadd.f32 %v2260_v9, %v2755_v10 }
  0xd5   :  { %v153_v11 = vpop.f32.mrf.mxu0 }
  0xd6   :  { %v154_v12 = vadd.f32 %v2755_v10, %v153_v11 }
  0xd9   :  { %v275_v13 = vpop.f32.mrf.mxu1 }
  0xda   :  { %v279_v14 = vadd.f32 %v275_v13, %v154_v12 }
  0xdb   :  { %v2280_v15 = vpop.f32.mrf.mxu1 }
  0xdc   :  { %2482 = vtanh.f32 %v279_v14  ;;  %v2109_v17 = vmul.f32 -1.442695, %v279_v14 }
  0xde   :  { %2484 = vpow2.f32 %v2109_v17 }
  0xe0   :  { %v2263_v54 = vpop.f32.mrf.mxu0 }
  0xe2   :  { %v163_v55 = vpop.f32.mrf.mxu0 }
  0xe3   :  { %v164_v60 = vadd.f32 %v2755_v10, %v163_v55 }
  0xe4   :  { %v2817_v56 = vpop.f32.mrf.mxu0 }
  0xe6   :  { %v2819_v57 = vpop.f32.mrf.mxu0 }
  0xe8   :  { %v2821_v58 = vpop.f32.mrf.mxu0 }
  0xe9   :  { %v2483_v16 = vpop.eup %2482 }
  0xea   :  { %289 = vrot.lane.b32.xlu0 %v2483_v16, %s2635_s27  ;;  %v2823_v59 = vpop.f32.mrf.mxu0 }
  0xeb   :  { %v2485_v18 = vpop.eup %2484 }
  0xec   :  { %v283_v19 = vadd.f32 1.0, %v2485_v18 }
  0xee   :  { %2486 = vrcp.f32 %v283_v19 }
  0xfb   :  { %v2487_v20 = vpop.eup %2486 }
  0xfc   :  { %v287_v23 = vmul.f32 0.0, %v2487_v20 }
 0x15c   :  { %v290_v21 = vpop.permute.xlu0 %289 }
 0x15d   :  { %v292_v22 = vmul.f32 %v2487_v20, %v290_v21 }
 0x15f   :  { %294 = vrot.lane.b32.xlu0 %v292_v22, %s2635_s27 }
 0x1d1   :  { %v295_v24 = vpop.permute.xlu0 %294 }
 0x1d2   :  { %v297_v25 = vadd.f32 %v295_v24, %v287_v23 }
 0x1d4   :  { %2488 = vtanh.f32 %v297_v25 }
 0x1e1   :  { %v2489_v26 = vpop.eup %2488 }
 0x1e2   :  { %300 = vrot.lane.b32.xlu1 %v2489_v26, %s2635_s27 }
 0x254   :  { %v301_v27 = vpop.permute.xlu1 %300 }
 0x255   :  { %v303_v28 = vmul.f32 %v2487_v20, %v301_v27  ;;  %v169_v20 = vadd.f32 %v2263_v54, %v2755_v10 }
 0x257   :  { %305 = vrot.lane.b32.xlu1 %v303_v28, %s2636_s3 }
 0x2c9   :  { %v306_v29 = vpop.permute.xlu1 %305 }
 0x2ca   :  { %308 = vst.msk [vmem:[#allocation2] sm:$0xff] %vm205_vm2, %v306_v29  ;;  %2290 = vmatmul.mubr.msk.f32.vlgmr.msra.gmra.mxu1 %vm205_vm2, %v306_v29 }
 0x2cb   :  { %2304 = vmatpush3.msra.mxu1 %v2699_v3  ;;  %2311 = vmatprep.mubr.msk.f32.mxu1 %vm2634_vm0, %v2633_v1 }
 0x2cc   :  { %2305 = vmatprep.subr.mxu1 %v2633_v1 }
 0x2cd   :  { %2306 = vmatpush3.msra.mxu1 %v2711_v6 }
 0x2ce   :  { %2307 = vmatprep.subr.mxu1 %v2633_v1 }
 0x2cf   :  { %2308 = vmatpush3.msra.mxu1 %v2719_v7 }
 0x2d0   :  { %2309 = vmatprep.subr.mxu1 %v2633_v1 }
 0x2d1   :  { %2310 = vmatpush3.msra.mxu1 %v2727_v8 }
 0x2d2   :  { %2325 = vmatprep.subr.mxu1 %v2633_v1 }
 0x38a   :  { %v379_v31 = vpop.f32.mrf.mxu1 }
 0x38b   :  { %v383_v32 = vadd.f32 %v379_v31, %v159_v30 }
 0x38c   :  { %v2291_v33 = vpop.f32.mrf.mxu1 }
 0x38d   :  { %2490 = vtanh.f32 %v383_v32  ;;  %v2111_v35 = vmul.f32 -1.442695, %v383_v32 }
 0x38f   :  { %2492 = vpow2.f32 %v2111_v35 }
 0x39a   :  { %v2491_v34 = vpop.eup %2490 }
 0x39b   :  { %393 = vrot.lane.b32.xlu0 %v2491_v34, %s2635_s27 }
 0x39c   :  { %v2493_v36 = vpop.eup %2492 }
 0x39d   :  { %v387_v37 = vadd.f32 1.0, %v2493_v36 }
 0x39f   :  { %2494 = vrcp.f32 %v387_v37 }
 0x3ac   :  { %v2495_v38 = vpop.eup %2494 }
 0x3ad   :  { %v391_v41 = vmul.f32 %v2495_v38, %v297_v25 }
 0x40d   :  { %v394_v39 = vpop.permute.xlu0 %393 }
 0x40e   :  { %v396_v40 = vmul.f32 %v2495_v38, %v394_v39 }
 0x410   :  { %398 = vrot.lane.b32.xlu1 %v396_v40, %s2635_s27 }
 0x482   :  { %v399_v42 = vpop.permute.xlu1 %398 }
 0x483   :  { %v401_v43 = vadd.f32 %v399_v42, %v391_v41 }
 0x485   :  { %2496 = vtanh.f32 %v401_v43 }
 0x492   :  { %v2497_v50 = vpop.eup %2496 }
 0x493   :  { %404 = vrot.lane.b32.xlu0 %v2497_v50, %s2635_s27 }
 0x505   :  { %v405_v51 = vpop.permute.xlu0 %404 }
 0x506   :  { %v407_v52 = vmul.f32 %v2495_v38, %v405_v51  ;;  %v174_v38 = vadd.f32 %v2755_v10, %v2819_v57 }
 0x508   :  { %409 = vrot.lane.b32.xlu1 %v407_v52, %s2636_s3 }
 0x57a   :  { %v410_v53 = vpop.permute.xlu1 %409 }
 0x57b   :  { %413 = vst.msk [vmem:[#allocation2 + $0x8] sm:$0xff] %vm205_vm2, %v410_v53  ;;  %2301 = vmatmul.mubr.msk.f32.vlgmr.msra.gmra.mxu0 %vm205_vm2, %v410_v53 }
 0x57c   :  { %2315 = vmatpush3.msra.mxu0 %v2699_v3  ;;  %2322 = vmatprep.mubr.msk.f32.mxu0 %vm2634_vm0, %v2633_v1 }
 0x57d   :  { %2316 = vmatprep.subr.mxu0 %v2633_v1 }
 0x57e   :  { %2317 = vmatpush3.msra.mxu0 %v2711_v6 }
 0x57f   :  { %2318 = vmatprep.subr.mxu0 %v2633_v1 }
 0x580   :  { %2319 = vmatpush3.msra.mxu0 %v2719_v7 }
 0x581   :  { %2320 = vmatprep.subr.mxu0 %v2633_v1 }
 0x582   :  { %2321 = vmatpush3.msra.mxu0 %v2727_v8 }
 0x583   :  { %2336 = vmatprep.subr.mxu0 %v2633_v1 }
 0x63b   :  { %v484_v61 = vpop.f32.mrf.mxu0 }
 0x63c   :  { %v488_v62 = vadd.f32 %v484_v61, %v164_v60 }
 0x63d   :  { %v2302_v63 = vpop.f32.mrf.mxu0 }
 0x63e   :  { %2498 = vtanh.f32 %v488_v62  ;;  %v2113_v2 = vmul.f32 -1.442695, %v488_v62 }
 0x640   :  { %2500 = vpow2.f32 %v2113_v2 }
 0x64b   :  { %v2499_v0 = vpop.eup %2498 }
 0x64c   :  { %498 = vrot.lane.b32.xlu0 %v2499_v0, %s2635_s27 }
 0x64d   :  { %v2501_v4 = vpop.eup %2500 }
 0x64e   :  { %v492_v5 = vadd.f32 1.0, %v2501_v4 }
 0x650   :  { %2502 = vrcp.f32 %v492_v5 }
 0x65d   :  { %v2503_v9 = vpop.eup %2502 }
 0x65e   :  { %v496_v13 = vmul.f32 %v2503_v9, %v401_v43 }
 0x6be   :  { %v499_v11 = vpop.permute.xlu0 %498 }
 0x6bf   :  { %v501_v12 = vmul.f32 %v2503_v9, %v499_v11 }
 0x6c1   :  { %503 = vrot.lane.b32.xlu1 %v501_v12, %s2635_s27 }
 0x733   :  { %v504_v14 = vpop.permute.xlu1 %503 }
 0x734   :  { %v506_v15 = vadd.f32 %v504_v14, %v496_v13 }
 0x736   :  { %2504 = vtanh.f32 %v506_v15 }
 0x743   :  { %v2505_v16 = vpop.eup %2504 }
 0x744   :  { %509 = vrot.lane.b32.xlu0 %v2505_v16, %s2635_s27  ;;  %v1044_v16 = vld [vmem:[#allocation2] sm:$0xff] }
 0x7b6   :  { %v510_v17 = vpop.permute.xlu0 %509 }
 0x7b7   :  { %v512_v18 = vmul.f32 %v2503_v9, %v510_v17  ;;  %v1055_v9 = vld [vmem:[%s3116_s4 + $0x18] sm:$0xff]  ;;  %v1053_v17 = vld [vmem:[%s3116_s4 + $0x8] sm:$0xff] }
 0x7b9   :  { %514 = vrot.lane.b32.xlu1 %v512_v18, %s2636_s3  ;;  %v1052_v18 = vld [vmem:[%s3116_s4] sm:$0xff] }
 0x82b   :  { %v515_v19 = vpop.permute.xlu1 %514 }
 0x82c   :  { %518 = vst.msk [vmem:[#allocation2 + $0x10] sm:$0xff] %vm205_vm2, %v515_v19  ;;  %2312 = vmatmul.mubr.msk.f32.vlgmr.msra.gmra.mxu1 %vm205_vm2, %v515_v19  ;;  %v1045_v19 = vld [vmem:[#allocation2 + $0x8] sm:$0xff] }
 0x82d   :  { %2326 = vmatpush3.msra.mxu1 %v2699_v3  ;;  %2333 = vmatprep.mubr.msk.f32.mxu1 %vm2634_vm0, %v2633_v1 }
 0x82e   :  { %2327 = vmatprep.subr.mxu1 %v2633_v1 }
 0x82f   :  { %2328 = vmatpush3.msra.mxu1 %v2711_v6 }
 0x830   :  { %2329 = vmatprep.subr.mxu1 %v2633_v1 }
 0x831   :  { %2330 = vmatpush3.msra.mxu1 %v2719_v7 }
 0x832   :  { %2331 = vmatprep.subr.mxu1 %v2633_v1 }
 0x833   :  { %2332 = vmatpush3.msra.mxu1 %v2727_v8 }
 0x834   :  { %2347 = vmatprep.subr.mxu1 %v2633_v1 }
 0x8ec   :  { %v589_v21 = vpop.f32.mrf.mxu1 }
 0x8ed   :  { %v593_v22 = vadd.f32 %v589_v21, %v169_v20  ;;  %v1046_v20 = vld [vmem:[#allocation2 + $0x10] sm:$0xff] }
 0x8ee   :  { %v2313_v23 = vpop.f32.mrf.mxu1 }
 0x8ef   :  { %2506 = vtanh.f32 %v593_v22  ;;  %v2115_v25 = vmul.f32 -1.442695, %v593_v22 }
 0x8f1   :  { %2508 = vpow2.f32 %v2115_v25 }
 0x8fc   :  { %v2507_v24 = vpop.eup %2506 }
 0x8fd   :  { %603 = vrot.lane.b32.xlu0 %v2507_v24, %s2635_s27  ;;  %v184_v24 = vadd.f32 %v2755_v10, %v2823_v59 }
 0x8fe   :  { %v2509_v26 = vpop.eup %2508 }
 0x8ff   :  { %v597_v27 = vadd.f32 1.0, %v2509_v26 }
 0x901   :  { %2510 = vrcp.f32 %v597_v27 }
 0x90e   :  { %v2511_v28 = vpop.eup %2510 }
 0x90f   :  { %v601_v31 = vmul.f32 %v2511_v28, %v506_v15  ;;  %v1054_v15 = vld [vmem:[%s3116_s4 + $0x10] sm:$0xff] }
 0x96f   :  { %v604_v29 = vpop.permute.xlu0 %603 }
 0x970   :  { %v606_v30 = vmul.f32 %v2511_v28, %v604_v29 }
 0x972   :  { %608 = vrot.lane.b32.xlu1 %v606_v30, %s2635_s27 }
 0x9e4   :  { %v609_v32 = vpop.permute.xlu1 %608 }
 0x9e5   :  { %v611_v33 = vadd.f32 %v609_v32, %v601_v31 }
 0x9e7   :  { %2512 = vtanh.f32 %v611_v33 }
 0x9f4   :  { %v2513_v34 = vpop.eup %2512 }
 0x9f5   :  { %614 = vrot.lane.b32.xlu0 %v2513_v34, %s2635_s27 }
 0xa67   :  { %v615_v35 = vpop.permute.xlu0 %614 }
 0xa68   :  { %v617_v36 = vmul.f32 %v2511_v28, %v615_v35 }
 0xa6a   :  { %619 = vrot.lane.b32.xlu1 %v617_v36, %s2636_s3 }
 0xadc   :  { %v620_v37 = vpop.permute.xlu1 %619 }
 0xadd   :  { %623 = vst.msk [vmem:[#allocation2 + $0x18] sm:$0xff] %vm205_vm2, %v620_v37  ;;  %2323 = vmatmul.mubr.msk.f32.vlgmr.msra.gmra.mxu0 %vm205_vm2, %v620_v37 }
 0xade   :  { %2337 = vmatpush3.msra.mxu0 %v2699_v3  ;;  %2344 = vmatprep.mubr.msk.f32.mxu0 %vm2634_vm0, %v2633_v1 }
 0xadf   :  { %2338 = vmatprep.subr.mxu0 %v2633_v1 }
 0xae0   :  { %2339 = vmatpush3.msra.mxu0 %v2711_v6 }
 0xae1   :  { %2340 = vmatprep.subr.mxu0 %v2633_v1 }
 0xae2   :  { %2341 = vmatpush3.msra.mxu0 %v2719_v7 }
 0xae3   :  { %2342 = vmatprep.subr.mxu0 %v2633_v1 }
 0xae4   :  { %2343 = vmatpush3.msra.mxu0 %v2727_v8  ;;  %v1047_v21 = vld [vmem:[#allocation2 + $0x18] sm:$0xff] }
 0xae5   :  { %2358 = vmatprep.subr.mxu0 %v1055_v9 }
 0xb9d   :  { %v694_v39 = vpop.f32.mrf.mxu0 }
 0xb9e   :  { %v698_v40 = vadd.f32 %v694_v39, %v174_v38  ;;  %v2914_v38 = vld [vmem:[%s3117_s5 + $0x18] sm:$0xff]  ;;  %v2920_v39 = vld [vmem:[%s3117_s5 + $0x10] sm:$0xff] }
 0xb9f   :  { %v2324_v41 = vpop.f32.mrf.mxu0 }
 0xba0   :  { %2514 = vtanh.f32 %v698_v40  ;;  %v2117_v43 = vmul.f32 -1.442695, %v698_v40  ;;  %v2927_v40 = vld [vmem:[%s3117_s5 + $0x8] sm:$0xff]  ;;  %v2934_v41 = vld [vmem:[%s3117_s5] sm:$0xff] }
 0xba2   :  { %2516 = vpow2.f32 %v2117_v43 }
 0xbad   :  { %v2515_v42 = vpop.eup %2514 }
 0xbae   :  { %708 = vrot.lane.b32.xlu0 %v2515_v42, %s2635_s27 }
 0xbaf   :  { %v2517_v44 = vpop.eup %2516 }
 0xbb0   :  { %v702_v45 = vadd.f32 1.0, %v2517_v44 }
 0xbb2   :  { %2518 = vrcp.f32 %v702_v45 }
 0xbbf   :  { %v2519_v46 = vpop.eup %2518 }
 0xbc0   :  { %v706_v49 = vmul.f32 %v2519_v46, %v611_v33 }
 0xc20   :  { %v709_v47 = vpop.permute.xlu0 %708 }
 0xc21   :  { %v711_v48 = vmul.f32 %v2519_v46, %v709_v47 }
 0xc23   :  { %713 = vrot.lane.b32.xlu1 %v711_v48, %s2635_s27 }
 0xc95   :  { %v714_v50 = vpop.permute.xlu1 %713 }
 0xc96   :  { %v716_v51 = vadd.f32 %v714_v50, %v706_v49 }
 0xc98   :  { %2520 = vtanh.f32 %v716_v51 }
 0xca5   :  { %v2521_v52 = vpop.eup %2520 }
 0xca6   :  { %719 = vrot.lane.b32.xlu0 %v2521_v52, %s2635_s27  ;;  %v2971_v52 = vld [vmem:[%s3118_s6] ss:$0 sm:$0xff] }
 0xd18   :  { %v720_v53 = vpop.permute.xlu0 %719 }
 0xd19   :  { %v722_v54 = vmul.f32 %v2519_v46, %v720_v53  ;;  %v189_v46 = vadd.f32 %v2821_v58, %v2755_v10 }
 0xd1b   :  { %724 = vrot.lane.b32.xlu1 %v722_v54, %s2636_s3 }
 0xd8d   :  { %v725_v55 = vpop.permute.xlu1 %724 }
 0xd8e   :  { %728 = vst.msk [vmem:[#allocation2 + $0x20] sm:$0xff] %vm205_vm2, %v725_v55  ;;  %2334 = vmatmul.mubr.msk.f32.vlgmr.msra.gmra.mxu1 %vm205_vm2, %v725_v55 }
 0xd8f   :  { %2348 = vmatpush3.msra.mxu1 %v2699_v3  ;;  %2355 = vmatprep.mubr.msk.f32.mxu1 %vm2634_vm0, %v2633_v1  ;;  %v179_v3 = vadd.f32 %v2817_v56, %v2755_v10 }
 0xd90   :  { %2349 = vmatprep.subr.mxu1 %v2633_v1 }
 0xd91   :  { %2350 = vmatpush3.msra.mxu1 %v2711_v6 }
 0xd92   :  { %2351 = vmatprep.subr.mxu1 %v2633_v1 }
 0xd93   :  { %2352 = vmatpush3.msra.mxu1 %v2719_v7 }
 0xd94   :  { %2353 = vmatprep.subr.mxu1 %v2633_v1 }
 0xd95   :  { %2354 = vmatpush3.msra.mxu1 %v2727_v8  ;;  %v1048_v22 = vld [vmem:[#allocation2 + $0x20] sm:$0xff] }
 0xd96   :  { %2378 = vmatprep.subr.mxu1 %v2633_v1 }
 0xe4e   :  { %v799_v57 = vpop.f32.mrf.mxu1 }
 0xe4f   :  { %v803_v60 = vadd.f32 %v799_v57, %v179_v3 }
 0xe50   :  { %v2335_v61 = vpop.f32.mrf.mxu1 }
 0xe51   :  { %2522 = vtanh.f32 %v803_v60  ;;  %v2119_v6 = vmul.f32 -1.442695, %v803_v60 }
 0xe53   :  { %2524 = vpow2.f32 %v2119_v6 }
 0xe5e   :  { %v2523_v62 = vpop.eup %2522 }
 0xe5f   :  { %813 = vrot.lane.b32.xlu0 %v2523_v62, %s2635_s27 }
 0xe60   :  { %v2525_v63 = vpop.eup %2524 }
 0xe61   :  { %v807_v7 = vadd.f32 1.0, %v2525_v63 }
 0xe63   :  { %2526 = vrcp.f32 %v807_v7 }
 0xe70   :  { %v2527_v0 = vpop.eup %2526 }
 0xe71   :  { %v811_v4 = vmul.f32 %v2527_v0, %v716_v51 }
 0xed1   :  { %v814_v2 = vpop.permute.xlu0 %813 }
 0xed2   :  { %v816_v8 = vmul.f32 %v2527_v0, %v814_v2 }
 0xed4   :  { %818 = vrot.lane.b32.xlu1 %v816_v8, %s2635_s27 }
 0xf46   :  { %v819_v5 = vpop.permute.xlu1 %818 }
 0xf47   :  { %v821_v56 = vadd.f32 %v819_v5, %v811_v4 }
 0xf49   :  { %2528 = vtanh.f32 %v821_v56 }
 0xf56   :  { %v2529_v11 = vpop.eup %2528 }
 0xf57   :  { %824 = vrot.lane.b32.xlu0 %v2529_v11, %s2635_s27 }
 0xfc9   :  { %v825_v12 = vpop.permute.xlu0 %824 }
 0xfca   :  { %v827_v13 = vmul.f32 %v2527_v0, %v825_v12 }
 0xfcc   :  { %829 = vrot.lane.b32.xlu1 %v827_v13, %s2636_s3 }
0x103e   :  { %v830_v14 = vpop.permute.xlu1 %829 }
0x103f   :  { %833 = vst.msk [vmem:[#allocation2 + $0x28] sm:$0xff] %vm205_vm2, %v830_v14  ;;  %2345 = vmatmul.mubr.msk.f32.vlgmr.msra.gmra.mxu0 %vm205_vm2, %v830_v14 }
0x1040   :  { %2359 = vmatpush3.msra.mxu0 %v1055_v9  ;;  %2366 = vmatprep.mubr.msk.f32.mxu0 %vm205_vm2, %v1044_v16 }
0x1041   :  { %2360 = vmatprep.subr.mxu0 %v1054_v15 }
0x1042   :  { %2361 = vmatpush3.msra.mxu0 %v1054_v15 }
0x1043   :  { %2362 = vmatprep.subr.mxu0 %v1053_v17 }
0x1044   :  { %2363 = vmatpush3.msra.mxu0 %v1053_v17 }
0x1045   :  { %2364 = vmatprep.subr.mxu0 %v1052_v18 }
0x1046   :  { %2365 = vmatpush3.msra.mxu0 %v1052_v18  ;;  %v1049_v23 = vld [vmem:[#allocation2 + $0x28] sm:$0xff] }
0x1047   :  { %2367 = vmatmul.mubr.msk.f32.vlgmr.msra.gmra.mxu0 %vm205_vm2, %v1045_v19  ;;  %2400 = vmatprep.subr.mxu0 %v2633_v1 }
0x1048   :  { %2369 = vmatprep.mubr.msk.f32.mxu0 %vm205_vm2, %v1046_v20  ;;  %2401 = vmatpush3.msra.mxu0 %v2914_v38 }
0x1049   :  { %2402 = vmatprep.subr.mxu0 %v2633_v1 }
0x104a   :  { %2403 = vmatpush3.msra.mxu0 %v2920_v39 }
0x104b   :  { %2370 = vmatmul.mubr.msk.f32.gmra.mxu0 %vm205_vm2, %v1047_v21  ;;  %2404 = vmatprep.subr.mxu0 %v2633_v1 }
0x104c   :  { %2372 = vmatprep.mubr.msk.f32.mxu0 %vm205_vm2, %v1048_v22  ;;  %2405 = vmatpush3.msra.mxu0 %v2927_v40 }
0x104d   :  { %2406 = vmatprep.subr.mxu0 %v2633_v1 }
0x104e   :  { %2407 = vmatpush3.msra.mxu0 %v2934_v41 }
0x104f   :  { %2373 = vmatmul.mubr.msk.f32.gmra.mxu0 %vm205_vm2, %v1049_v23  ;;  %2422 = vmatprep.subr.mxu0 %v2633_v1 }
0x10ff   :  { %v904_v25 = vpop.f32.mrf.mxu0 }
0x1100   :  { %v908_v26 = vadd.f32 %v904_v25, %v184_v24 }
0x1101   :  { %v2346_v27 = vpop.f32.mrf.mxu0 }
0x1102   :  { %2530 = vtanh.f32 %v908_v26  ;;  %v2121_v29 = vmul.f32 -1.442695, %v908_v26 }
0x1104   :  { %2532 = vpow2.f32 %v2121_v29 }
0x1107   :  { %v2966_v47 = vpop.f32.mrf.mxu0 }
0x1108   :  { %v1159_v22 = vadd.f32 %v2966_v47, %v2971_v52 }
0x1109   :  { %v1153_v51 = vpop.f32.mrf.mxu0 }
0x110a   :  { %v1154_v53 = vadd.f32 %v2971_v52, %v1153_v51 }
0x110f   :  { %v2531_v28 = vpop.eup %2530 }
0x1110   :  { %918 = vrot.lane.b32.xlu0 %v2531_v28, %s2635_s27 }
0x1111   :  { %v2533_v30 = vpop.eup %2532 }
0x1112   :  { %v912_v31 = vadd.f32 1.0, %v2533_v30 }
0x1114   :  { %2534 = vrcp.f32 %v912_v31 }
0x1121   :  { %v2535_v32 = vpop.eup %2534 }
0x1122   :  { %v916_v35 = vmul.f32 %v2535_v32, %v821_v56 }
0x1182   :  { %v919_v33 = vpop.permute.xlu0 %918 }
0x1183   :  { %v921_v34 = vmul.f32 %v2535_v32, %v919_v33 }
0x1185   :  { %923 = vrot.lane.b32.xlu1 %v921_v34, %s2635_s27 }
0x11f7   :  { %v924_v36 = vpop.permute.xlu1 %923 }
0x11f8   :  { %v2907_v59 = vadd.f32 %v924_v36, %v916_v35 }
0x11fa   :  { %2536 = vtanh.f32 %v2907_v59 }
0x1207   :  { %v2537_v37 = vpop.eup %2536 }
0x1208   :  { %929 = vrot.lane.b32.xlu0 %v2537_v37, %s2635_s27 }
0x127a   :  { %v930_v42 = vpop.permute.xlu0 %929 }
0x127b   :  { %v932_v43 = vmul.f32 %v2535_v32, %v930_v42 }
0x127d   :  { %934 = vrot.lane.b32.xlu1 %v932_v43, %s2636_s3 }
0x12ef   :  { %v935_v44 = vpop.permute.xlu1 %934 }
0x12f0   :  { %938 = vst.msk [vmem:[#allocation2 + $0x30] sm:$0xff] %vm205_vm2, %v935_v44  ;;  %2356 = vmatmul.mubr.msk.f32.vlgmr.msra.gmra.mxu1 %vm205_vm2, %v935_v44 }
0x12f1   :  { %2379 = vmatpush3.msra.mxu1 %v2914_v38  ;;  %2386 = vmatprep.mubr.msk.f32.mxu1 %vm2634_vm0, %v2633_v1 }
0x12f2   :  { %2380 = vmatprep.subr.mxu1 %v2633_v1 }
0x12f3   :  { %2381 = vmatpush3.msra.mxu1 %v2920_v39 }
0x12f4   :  { %2382 = vmatprep.subr.mxu1 %v2633_v1 }
0x12f5   :  { %2383 = vmatpush3.msra.mxu1 %v2927_v40 }
0x12f6   :  { %2384 = vmatprep.subr.mxu1 %v2633_v1 }
0x12f7   :  { %2385 = vmatpush3.msra.mxu1 %v2934_v41  ;;  %v1050_v45 = vld [vmem:[#allocation2 + $0x30] sm:$0xff] }
0x12f8   :  { %2387 = vmatmul.mubr.f32.vlgmr.msra.gmra.mxu1 %v2633_v1  ;;  %2375 = vmatprep.mubr.msk.f32.mxu0 %vm205_vm2, %v1050_v45  ;;  %v2371_v45 = vpop.f32.mrf.mxu0 }
0x12f9   :  { %2389 = vmatprep.subr.mxu1 %v2633_v1  ;;  %2397 = vmatprep.mubr.msk.f32.mxu1 %vm2634_vm0, %v2633_v1 }
0x12fa   :  { %2390 = vmatpush3.msra.mxu1 %v2914_v38 }
0x12fb   :  { %2391 = vmatprep.subr.mxu1 %v2633_v1 }
0x12fc   :  { %2392 = vmatpush3.msra.mxu1 %v2920_v39 }
0x12fd   :  { %2393 = vmatprep.subr.mxu1 %v2633_v1 }
0x12fe   :  { %2394 = vmatpush3.msra.mxu1 %v2927_v40 }
0x12ff   :  { %2395 = vmatprep.subr.mxu1 %v2633_v1 }
0x1300   :  { %2396 = vmatpush3.msra.mxu1 %v2934_v41 }
0x1301   :  { %2411 = vmatprep.subr.mxu1 %v2633_v1 }
0x13b0   :  { %v1009_v48 = vpop.f32.mrf.mxu1 }
0x13b1   :  { %v1013_v49 = vadd.f32 %v1009_v48, %v189_v46  ;;  %v1163_v46 = vpop.f32.mrf.mxu0 }
0x13b2   :  { %v2357_v50 = vpop.f32.mrf.mxu1  ;;  %v1164_v51 = vadd.f32 %v2971_v52, %v1163_v46 }
0x13b3   :  { %v2123_v4 = vmul.f32 -1.442695, %v1013_v49  ;;  %v3015_v47 = vpop.f32.mrf.mxu0 }
0x13b5   :  { %v3017_v48 = vpop.f32.mrf.mxu0 }
0x13b8   :  { %v1271_v54 = vpop.f32.mrf.mxu1 }
0x13b9   :  { %v1275_v55 = vadd.f32 %v1271_v54, %v1154_v53 }
0x13ba   :  { %v2388_v3 = vpop.f32.mrf.mxu1 }
0x13bb   :  { %2538 = vtanh.f32 %v1275_v55  ;;  %v2133_v10 = vmul.f32 -1.442695, %v1275_v55 }
0x13bd   :  { %2540 = vpow2.f32 %v2133_v10 }
0x13c8   :  { %v2539_v57 = vpop.eup %2538 }
0x13c9   :  { %1285 = vrot.lane.b32.xlu0 %v2539_v57, %s2635_s27 }
0x13ca   :  { %v2541_v58 = vpop.eup %2540 }
0x13cb   :  { %v1279_v60 = vadd.f32 1.0, %v2541_v58 }
0x13cd   :  { %2542 = vrcp.f32 %v1279_v60 }
0x13da   :  { %v2543_v61 = vpop.eup %2542 }
0x13db   :  { %v1283_v63 = vmul.f32 0.0, %v2543_v61 }
0x143b   :  { %v1286_v62 = vpop.permute.xlu0 %1285 }
0x143c   :  { %v1288_v6 = vmul.f32 %v2543_v61, %v1286_v62 }
0x143e   :  { %1290 = vrot.lane.b32.xlu1 %v1288_v6, %s2635_s27 }
0x14b0   :  { %v1291_v7 = vpop.permute.xlu1 %1290 }
0x14b1   :  { %v1293_v0 = vadd.f32 %v1291_v7, %v1283_v63 }
0x14b3   :  { %2544 = vtanh.f32 %v1293_v0 }
0x14b4   :  { %2546 = vtanh.f32 %v1013_v49 }
0x14b5   :  { %2548 = vpow2.f32 %v2123_v4 }
0x14c0   :  { %v2545_v2 = vpop.eup %2544 }
0x14c1   :  { %1296 = vrot.lane.b32.xlu0 %v2545_v2, %s2635_s27  ;;  %v2547_v8 = vpop.eup %2546 }
0x14c2   :  { %v2549_v5 = vpop.eup %2548 }
0x14c3   :  { %v1017_v56 = vadd.f32 1.0, %v2549_v5  ;;  %v1169_v5 = vadd.f32 %v2371_v45, %v2971_v52 }
0x14c5   :  { %1023 = vrot.lane.b32.xlu0 %v2547_v8, %s2635_s27  ;;  %2550 = vrcp.f32 %v1017_v56 }
0x14d2   :  { %v2551_v12 = vpop.eup %2550 }
0x14d3   :  { %v1021_v16 = vmul.f32 %v2551_v12, %v2907_v59 }
0x1533   :  { %v1297_v9 = vpop.permute.xlu0 %1296 }
0x1534   :  { %v1299_v11 = vmul.f32 %v2543_v61, %v1297_v9 }
0x1536   :  { %1302 = vrot.lane.b32.xlu1 %v1299_v11, %s2636_s3 }
0x1537   :  { %v1024_v13 = vpop.permute.xlu0 %1023 }
0x1538   :  { %v1026_v14 = vmul.f32 %v2551_v12, %v1024_v13 }
0x153a   :  { %1028 = vrot.lane.b32.xlu0 %v1026_v14, %s2635_s27 }
0x15a8   :  { %v1303_v15 = vpop.permute.xlu1 %1302 }
0x15a9   :  { %2398 = vmatmul.mubr.msk.f32.vlgmr.msra.gmra.mxu1 %vm205_vm2, %v1303_v15 }
0x15aa   :  { %2412 = vmatpush3.msra.mxu1 %v2914_v38  ;;  %2419 = vmatprep.mubr.msk.f32.mxu1 %vm2634_vm0, %v2633_v1 }
0x15ab   :  { %2413 = vmatprep.subr.mxu1 %v2633_v1 }
0x15ac   :  { %v1029_v17 = vpop.permute.xlu0 %1028  ;;  %2414 = vmatpush3.msra.mxu1 %v2920_v39 }
0x15ad   :  { %v1031_v18 = vadd.f32 %v1029_v17, %v1021_v16  ;;  %2415 = vmatprep.subr.mxu1 %v2633_v1 }
0x15ae   :  { %2416 = vmatpush3.msra.mxu1 %v2927_v40 }
0x15af   :  { %2552 = vtanh.f32 %v1031_v18  ;;  %2417 = vmatprep.subr.mxu1 %v2633_v1 }
0x15b0   :  { %2418 = vmatpush3.msra.mxu1 %v2934_v41 }
0x15b1   :  { %2433 = vmatprep.subr.mxu1 %v2633_v1 }
0x15bc   :  { %v2553_v19 = vpop.eup %2552 }
0x15bd   :  { %1034 = vrot.lane.b32.xlu0 %v2553_v19, %s2635_s27 }
0x162f   :  { %v1035_v20 = vpop.permute.xlu0 %1034 }
0x1630   :  { %v1037_v21 = vmul.f32 %v2551_v12, %v1035_v20 }
0x1632   :  { %1039 = vrot.lane.b32.xlu0 %v1037_v21, %s2636_s3 }
0x1669   :  { %v1372_v23 = vpop.f32.mrf.mxu1 }
0x166a   :  { %v1376_v24 = vadd.f32 %v1372_v23, %v1159_v22 }
0x166b   :  { %v2399_v25 = vpop.f32.mrf.mxu1 }
0x166c   :  { %2554 = vtanh.f32 %v1376_v24  ;;  %v2135_v29 = vmul.f32 -1.442695, %v1376_v24 }
0x166e   :  { %2556 = vpow2.f32 %v2135_v29 }
0x1679   :  { %v2555_v26 = vpop.eup %2554 }
0x167a   :  { %1386 = vrot.lane.b32.xlu1 %v2555_v26, %s2635_s27  ;;  %v1174_v26 = vadd.f32 %v2971_v52, %v3017_v48  ;;  %v1179_v48 = vadd.f32 %v3015_v47, %v2971_v52 }
0x167b   :  { %v2557_v30 = vpop.eup %2556 }
0x167c   :  { %v1380_v31 = vadd.f32 1.0, %v2557_v30 }
0x167e   :  { %2558 = vrcp.f32 %v1380_v31 }
0x168b   :  { %v2559_v32 = vpop.eup %2558 }
0x168c   :  { %v1384_v35 = vmul.f32 %v2559_v32, %v1293_v0 }
0x16a4   :  { %v1040_v27 = vpop.permute.xlu0 %1039 }
0x16a5   :  { %1043 = vst.msk [vmem:[#allocation2 + $0x38] sm:$0xff] %vm205_vm2, %v1040_v27 }
0x16ac   :  { %v1051_v28 = vld [vmem:[#allocation2 + $0x38] sm:$0xff] }
0x16ad   :  { %2376 = vmatmul.mubr.msk.f32.gmra.mxu0 %vm205_vm2, %v1051_v28 }
0x16ae   :  { %2408 = vmatprep.mubr.msk.f32.mxu0 %vm2634_vm0, %v2633_v1 }
0x16ec   :  { %v1387_v33 = vpop.permute.xlu1 %1386 }
0x16ed   :  { %v1389_v34 = vmul.f32 %v2559_v32, %v1387_v33 }
0x16ef   :  { %1391 = vrot.lane.b32.xlu1 %v1389_v34, %s2635_s27 }
0x1761   :  { %v1392_v36 = vpop.permute.xlu1 %1391 }
0x1762   :  { %v1394_v59 = vadd.f32 %v1392_v36, %v1384_v35 }
0x1764   :  { %2560 = vtanh.f32 %v1394_v59 }
0x176d   :  { %v3019_v49 = vpop.f32.mrf.mxu0 }
0x176f   :  { %v3021_v50 = vpop.f32.mrf.mxu0 }
0x1771   :  { %v2561_v37 = vpop.eup %2560 }
0x1772   :  { %1397 = vrot.lane.b32.xlu1 %v2561_v37, %s2635_s27 }
0x17e4   :  { %v1398_v42 = vpop.permute.xlu1 %1397 }
0x17e5   :  { %v1400_v43 = vmul.f32 %v2559_v32, %v1398_v42 }
0x17e7   :  { %1403 = vrot.lane.b32.xlu1 %v1400_v43, %s2636_s3 }
0x1859   :  { %v1404_v44 = vpop.permute.xlu1 %1403 }
0x185a   :  { %2409 = vmatmul.mubr.msk.f32.vlgmr.msra.gmra.mxu0 %vm205_vm2, %v1404_v44 }
0x185b   :  { %2423 = vmatpush3.msra.mxu0 %v2914_v38  ;;  %2430 = vmatprep.mubr.msk.f32.mxu0 %vm2634_vm0, %v2633_v1 }
0x185c   :  { %2424 = vmatprep.subr.mxu0 %v2633_v1 }
0x185d   :  { %2425 = vmatpush3.msra.mxu0 %v2920_v39 }
0x185e   :  { %2426 = vmatprep.subr.mxu0 %v2633_v1 }
0x185f   :  { %2427 = vmatpush3.msra.mxu0 %v2927_v40 }
0x1860   :  { %2428 = vmatprep.subr.mxu0 %v2633_v1 }
0x1861   :  { %2429 = vmatpush3.msra.mxu0 %v2934_v41 }
0x1862   :  { %2444 = vmatprep.subr.mxu0 %v2633_v1 }
0x191a   :  { %v1473_v53 = vpop.f32.mrf.mxu0 }
0x191b   :  { %v1477_v54 = vadd.f32 %v1473_v53, %v1164_v51 }
0x191c   :  { %v2410_v55 = vpop.f32.mrf.mxu0 }
0x191d   :  { %2562 = vtanh.f32 %v1477_v54  ;;  %v2137_v57 = vmul.f32 -1.442695, %v1477_v54 }
0x191f   :  { %2564 = vpow2.f32 %v2137_v57 }
0x192a   :  { %v2563_v3 = vpop.eup %2562 }
0x192b   :  { %1487 = vrot.lane.b32.xlu0 %v2563_v3, %s2635_s27 }
0x192c   :  { %v2565_v10 = vpop.eup %2564 }
0x192d   :  { %v1481_v58 = vadd.f32 1.0, %v2565_v10 }
0x192f   :  { %2566 = vrcp.f32 %v1481_v58 }
0x193c   :  { %v2567_v60 = vpop.eup %2566 }
0x193d   :  { %v1485_v6 = vmul.f32 %v2567_v60, %v1394_v59 }
0x199d   :  { %v1488_v61 = vpop.permute.xlu0 %1487 }
0x199e   :  { %v1490_v62 = vmul.f32 %v2567_v60, %v1488_v61 }
0x19a0   :  { %1492 = vrot.lane.b32.xlu1 %v1490_v62, %s2635_s27 }
0x1a12   :  { %v1493_v63 = vpop.permute.xlu1 %1492 }
0x1a13   :  { %v1495_v7 = vadd.f32 %v1493_v63, %v1485_v6  ;;  %v1184_v63 = vadd.f32 %v2971_v52, %v3021_v50 }
0x1a15   :  { %2568 = vtanh.f32 %v1495_v7 }
0x1a22   :  { %v2569_v0 = vpop.eup %2568 }
0x1a23   :  { %1498 = vrot.lane.b32.xlu0 %v2569_v0, %s2635_s27 }
0x1a95   :  { %v1499_v2 = vpop.permute.xlu0 %1498 }
0x1a96   :  { %v1501_v8 = vmul.f32 %v2567_v60, %v1499_v2 }
0x1a98   :  { %1504 = vrot.lane.b32.xlu1 %v1501_v8, %s2636_s3 }
0x1b0a   :  { %v1505_v4 = vpop.permute.xlu1 %1504 }
0x1b0b   :  { %2420 = vmatmul.mubr.msk.f32.vlgmr.msra.gmra.mxu1 %vm205_vm2, %v1505_v4 }
0x1b0c   :  { %2434 = vmatpush3.msra.mxu1 %v2914_v38  ;;  %2441 = vmatprep.mubr.msk.f32.mxu1 %vm2634_vm0, %v2633_v1 }
0x1b0d   :  { %2435 = vmatprep.subr.mxu1 %v2633_v1 }
0x1b0e   :  { %2436 = vmatpush3.msra.mxu1 %v2920_v39 }
0x1b0f   :  { %2437 = vmatprep.subr.mxu1 %v2633_v1 }
0x1b10   :  { %2438 = vmatpush3.msra.mxu1 %v2927_v40 }
0x1b11   :  { %2439 = vmatprep.subr.mxu1 %v2633_v1 }
0x1b12   :  { %2440 = vmatpush3.msra.mxu1 %v2934_v41 }
0x1b13   :  { %2455 = vmatprep.subr.mxu1 %v2633_v1 }
0x1bcb   :  { %v1574_v56 = vpop.f32.mrf.mxu1 }
0x1bcc   :  { %v1578_v9 = vadd.f32 %v1574_v56, %v1169_v5 }
0x1bcd   :  { %v2421_v11 = vpop.f32.mrf.mxu1 }
0x1bce   :  { %2570 = vtanh.f32 %v1578_v9  ;;  %v2139_v13 = vmul.f32 -1.442695, %v1578_v9 }
0x1bd0   :  { %2572 = vpow2.f32 %v2139_v13 }
0x1bdb   :  { %v2571_v12 = vpop.eup %2570 }
0x1bdc   :  { %1588 = vrot.lane.b32.xlu0 %v2571_v12, %s2635_s27 }
0x1bdd   :  { %v2573_v14 = vpop.eup %2572 }
0x1bde   :  { %v1582_v15 = vadd.f32 1.0, %v2573_v14 }
0x1be0   :  { %2574 = vrcp.f32 %v1582_v15 }
0x1bed   :  { %v2575_v16 = vpop.eup %2574 }
0x1bee   :  { %v1586_v19 = vmul.f32 %v2575_v16, %v1495_v7 }
0x1c4e   :  { %v1589_v17 = vpop.permute.xlu0 %1588 }
0x1c4f   :  { %v1591_v18 = vmul.f32 %v2575_v16, %v1589_v17 }
0x1c51   :  { %1593 = vrot.lane.b32.xlu1 %v1591_v18, %s2635_s27 }
0x1cc3   :  { %v1594_v20 = vpop.permute.xlu1 %1593 }
0x1cc4   :  { %v1596_v21 = vadd.f32 %v1594_v20, %v1586_v19  ;;  %v1189_v19 = vadd.f32 %v3019_v49, %v2971_v52  ;;  %v2010_v49 = vld [vmem:[%s3119_s7 + $0x18] sm:$0xff] }
0x1cc6   :  { %2576 = vtanh.f32 %v1596_v21 }
0x1cd3   :  { %v2577_v22 = vpop.eup %2576 }
0x1cd4   :  { %1599 = vrot.lane.b32.xlu0 %v2577_v22, %s2635_s27 }
0x1d46   :  { %v1600_v23 = vpop.permute.xlu0 %1599 }
0x1d47   :  { %v1602_v24 = vmul.f32 %v2575_v16, %v1600_v23 }
0x1d49   :  { %1605 = vrot.lane.b32.xlu1 %v1602_v24, %s2636_s3 }
0x1dbb   :  { %v1606_v25 = vpop.permute.xlu1 %1605 }
0x1dbc   :  { %2431 = vmatmul.mubr.msk.f32.vlgmr.msra.gmra.mxu0 %vm205_vm2, %v1606_v25 }
0x1dbd   :  { %2445 = vmatpush3.msra.mxu0 %v2914_v38  ;;  %2452 = vmatprep.mubr.msk.f32.mxu0 %vm2634_vm0, %v2633_v1 }
0x1dbe   :  { %2446 = vmatprep.subr.mxu0 %v2633_v1 }
0x1dbf   :  { %2447 = vmatpush3.msra.mxu0 %v2920_v39 }
0x1dc0   :  { %2448 = vmatprep.subr.mxu0 %v2633_v1 }
0x1dc1   :  { %2449 = vmatpush3.msra.mxu0 %v2927_v40 }
0x1dc2   :  { %2450 = vmatprep.subr.mxu0 %v2633_v1 }
0x1dc3   :  { %2451 = vmatpush3.msra.mxu0 %v2934_v41 }
0x1dc4   :  { %2466 = vmatprep.subr.mxu0 %v2633_v1 }
0x1e7c   :  { %v1675_v27 = vpop.f32.mrf.mxu0 }
0x1e7d   :  { %v1679_v28 = vadd.f32 %v1675_v27, %v1174_v26 }
0x1e7e   :  { %v2432_v29 = vpop.f32.mrf.mxu0 }
0x1e7f   :  { %2578 = vtanh.f32 %v1679_v28  ;;  %v2141_v31 = vmul.f32 -1.442695, %v1679_v28 }
0x1e81   :  { %2580 = vpow2.f32 %v2141_v31 }
0x1e8c   :  { %v2579_v30 = vpop.eup %2578 }
0x1e8d   :  { %1689 = vrot.lane.b32.xlu0 %v2579_v30, %s2635_s27 }
0x1e8e   :  { %v2581_v32 = vpop.eup %2580 }
0x1e8f   :  { %v1683_v33 = vadd.f32 1.0, %v2581_v32  ;;  %v2009_v32 = vld [vmem:[%s3119_s7 + $0x10] sm:$0xff] }
0x1e91   :  { %2582 = vrcp.f32 %v1683_v33  ;;  %v2008_v33 = vld [vmem:[%s3119_s7 + $0x8] sm:$0xff] }
0x1e9e   :  { %v2583_v34 = vpop.eup %2582 }
0x1e9f   :  { %v1687_v59 = vmul.f32 %v2583_v34, %v1596_v21 }
0x1eff   :  { %v1690_v35 = vpop.permute.xlu0 %1689 }
0x1f00   :  { %v1692_v36 = vmul.f32 %v2583_v34, %v1690_v35 }
0x1f02   :  { %1694 = vrot.lane.b32.xlu1 %v1692_v36, %s2635_s27 }
0x1f74   :  { %v1695_v37 = vpop.permute.xlu1 %1694 }
0x1f75   :  { %v1697_v42 = vadd.f32 %v1695_v37, %v1687_v59 }
0x1f77   :  { %2584 = vtanh.f32 %v1697_v42 }
0x1f84   :  { %v2585_v43 = vpop.eup %2584 }
0x1f85   :  { %1700 = vrot.lane.b32.xlu0 %v2585_v43, %s2635_s27 }
0x1ff7   :  { %v1701_v44 = vpop.permute.xlu0 %1700 }
0x1ff8   :  { %v1703_v45 = vmul.f32 %v2583_v34, %v1701_v44  ;;  %v2007_v34 = vld [vmem:[%s3119_s7] sm:$0xff] }
0x1ffa   :  { %1706 = vrot.lane.b32.xlu1 %v1703_v45, %s2636_s3 }
0x206c   :  { %v1707_v46 = vpop.permute.xlu1 %1706 }
0x206d   :  { %2442 = vmatmul.mubr.msk.f32.vlgmr.msra.gmra.mxu1 %vm205_vm2, %v1707_v46 }
0x206e   :  { %2456 = vmatpush3.msra.mxu1 %v2914_v38  ;;  %2463 = vmatprep.mubr.msk.f32.mxu1 %vm2634_vm0, %v2633_v1 }
0x206f   :  { %2457 = vmatprep.subr.mxu1 %v2633_v1 }
0x2070   :  { %2458 = vmatpush3.msra.mxu1 %v2920_v39 }
0x2071   :  { %2459 = vmatprep.subr.mxu1 %v2633_v1 }
0x2072   :  { %2460 = vmatpush3.msra.mxu1 %v2927_v40 }
0x2073   :  { %2461 = vmatprep.subr.mxu1 %v2633_v1 }
0x2074   :  { %2462 = vmatpush3.msra.mxu1 %v2934_v41 }
0x212d   :  { %v1776_v51 = vpop.f32.mrf.mxu1 }
0x212e   :  { %v1780_v38 = vadd.f32 %v1776_v51, %v1179_v48 }
0x212f   :  { %v2443_v53 = vpop.f32.mrf.mxu1 }
0x2130   :  { %2586 = vtanh.f32 %v1780_v38  ;;  %v2143_v55 = vmul.f32 -1.442695, %v1780_v38 }
0x2132   :  { %2588 = vpow2.f32 %v2143_v55 }
0x213d   :  { %v2587_v54 = vpop.eup %2586 }
0x213e   :  { %1790 = vrot.lane.b32.xlu0 %v2587_v54, %s2635_s27 }
0x213f   :  { %v2589_v39 = vpop.eup %2588 }
0x2140   :  { %v1784_v3 = vadd.f32 1.0, %v2589_v39 }
0x2142   :  { %2590 = vrcp.f32 %v1784_v3 }
0x214f   :  { %v2591_v40 = vpop.eup %2590 }
0x2150   :  { %v1788_v41 = vmul.f32 %v2591_v40, %v1697_v42  ;;  %v2148_v42 = vld [vmem:[#allocation4] ss:$0 sm:$0xff] }
0x21b0   :  { %v1791_v57 = vpop.permute.xlu0 %1790 }
0x21b1   :  { %v1793_v10 = vmul.f32 %v2591_v40, %v1791_v57 }
0x21b3   :  { %1795 = vrot.lane.b32.xlu1 %v1793_v10, %s2635_s27 }
0x2225   :  { %v1796_v58 = vpop.permute.xlu1 %1795 }
0x2226   :  { %v1798_v47 = vadd.f32 %v1796_v58, %v1788_v41 }
0x2228   :  { %2592 = vtanh.f32 %v1798_v47 }
0x2235   :  { %v2593_v60 = vpop.eup %2592 }
0x2236   :  { %1801 = vrot.lane.b32.xlu0 %v2593_v60, %s2635_s27 }
0x22a8   :  { %v1802_v61 = vpop.permute.xlu0 %1801 }
0x22a9   :  { %v1804_v62 = vmul.f32 %v2591_v40, %v1802_v61 }
0x22ab   :  { %1807 = vrot.lane.b32.xlu1 %v1804_v62, %s2636_s3 }
0x231d   :  { %v1808_v6 = vpop.permute.xlu1 %1807 }
0x231e   :  { %2453 = vmatmul.mubr.msk.f32.vlgmr.msra.gmra.mxu0 %vm205_vm2, %v1808_v6 }
0x231f   :  { %2474 = vmatprep.mubr.msk.f32.mxu0 %vm2634_vm0, %v2633_v1  ;;  %2467 = vmatpush3.msra.mxu0 %v2010_v49 }
0x2320   :  { %2468 = vmatprep.subr.mxu0 %v2633_v1 }
0x2321   :  { %2469 = vmatpush3.msra.mxu0 %v2009_v32 }
0x2322   :  { %2470 = vmatprep.subr.mxu0 %v2633_v1 }
0x2323   :  { %2471 = vmatpush3.msra.mxu0 %v2008_v33 }
0x2324   :  { %2472 = vmatprep.subr.mxu0 %v2633_v1 }
0x2325   :  { %2473 = vmatpush3.msra.mxu0 %v2007_v34 }
0x23de   :  { %v1877_v7 = vpop.f32.mrf.mxu0 }
0x23df   :  { %v1881_v0 = vadd.f32 %v1877_v7, %v1184_v63 }
0x23e0   :  { %v2454_v2 = vpop.f32.mrf.mxu0 }
0x23e1   :  { %2594 = vtanh.f32 %v1881_v0  ;;  %v2145_v4 = vmul.f32 -1.442695, %v1881_v0 }
0x23e3   :  { %2596 = vpow2.f32 %v2145_v4 }
0x23ee   :  { %v2595_v8 = vpop.eup %2594 }
0x23ef   :  { %1891 = vrot.lane.b32.xlu0 %v2595_v8, %s2635_s27 }
0x23f0   :  { %v2597_v5 = vpop.eup %2596 }
0x23f1   :  { %v1885_v56 = vadd.f32 1.0, %v2597_v5 }
0x23f3   :  { %2598 = vrcp.f32 %v1885_v56 }
0x2400   :  { %v2599_v9 = vpop.eup %2598 }
0x2401   :  { %v1889_v13 = vmul.f32 %v2599_v9, %v1798_v47 }
0x2461   :  { %v1892_v11 = vpop.permute.xlu0 %1891 }
0x2462   :  { %v1894_v12 = vmul.f32 %v2599_v9, %v1892_v11 }
0x2464   :  { %1896 = vrot.lane.b32.xlu1 %v1894_v12, %s2635_s27 }
0x24d6   :  { %v1897_v14 = vpop.permute.xlu1 %1896 }
0x24d7   :  { %v1899_v50 = vadd.f32 %v1897_v14, %v1889_v13 }
0x24d9   :  { %2600 = vtanh.f32 %v1899_v50 }
0x24e6   :  { %v2601_v15 = vpop.eup %2600 }
0x24e7   :  { %1902 = vrot.lane.b32.xlu0 %v2601_v15, %s2635_s27 }
0x2559   :  { %v1903_v16 = vpop.permute.xlu0 %1902 }
0x255a   :  { %v1905_v17 = vmul.f32 %v2599_v9, %v1903_v16 }
0x255c   :  { %1908 = vrot.lane.b32.xlu1 %v1905_v17, %s2636_s3 }
0x25ce   :  { %v1909_v18 = vpop.permute.xlu1 %1908 }
0x25cf   :  { %2464 = vmatmul.mubr.msk.f32.vlgmr.msra.gmra.mxu1 %vm205_vm2, %v1909_v18 }
0x268f   :  { %v1978_v20 = vpop.f32.mrf.mxu1 }
0x2690   :  { %v1982_v21 = vadd.f32 %v1978_v20, %v1189_v19 }
0x2691   :  { %v2465_v22 = vpop.f32.mrf.mxu1 }
0x2692   :  { %2602 = vtanh.f32 %v1982_v21  ;;  %v2147_v24 = vmul.f32 -1.442695, %v1982_v21 }
0x2694   :  { %2604 = vpow2.f32 %v2147_v24 }
0x269f   :  { %v2603_v23 = vpop.eup %2602 }
0x26a0   :  { %1992 = vrot.lane.b32.xlu0 %v2603_v23, %s2635_s27 }
0x26a1   :  { %v2605_v25 = vpop.eup %2604 }
0x26a2   :  { %v1986_v26 = vadd.f32 1.0, %v2605_v25 }
0x26a4   :  { %2606 = vrcp.f32 %v1986_v26 }
0x26b1   :  { %v2607_v27 = vpop.eup %2606 }
0x26b2   :  { %v1990_v30 = vmul.f32 %v2607_v27, %v1899_v50 }
0x2712   :  { %v1993_v28 = vpop.permute.xlu0 %1992 }
0x2713   :  { %v1995_v29 = vmul.f32 %v2607_v27, %v1993_v28 }
0x2715   :  { %1997 = vrot.lane.b32.xlu1 %v1995_v29, %s2635_s27 }
0x2787   :  { %v1998_v31 = vpop.permute.xlu1 %1997 }
0x2788   :  { %v2000_v52 = vadd.f32 %v1998_v31, %v1990_v30 }
0x278a   :  { %2608 = vtanh.f32 %v2000_v52 }
0x2797   :  { %v2609_v35 = vpop.eup %2608 }
0x2798   :  { %2003 = vrot.lane.b32.xlu0 %v2609_v35, %s2635_s27 }
0x280a   :  { %v2004_v36 = vpop.permute.xlu0 %2003 }
0x280b   :  { %v2006_v59 = vmul.f32 %v2607_v27, %v2004_v36 }
0x280d   :  { %2019 = vrot.lane.b32.xlu1 %v2006_v59, %s2636_s3 }
0x287f   :  { %v2020_v37 = vpop.permute.xlu1 %2019 }
0x2880   :  { %2475 = vmatmul.mubr.msk.f32.vlgmr.msra.gmra.mxu0 %vm205_vm2, %v2020_v37 }
0x2940   :  { %v2089_v43 = vpop.f32.mrf.mxu0 }
0x2941   :  { %v2090_v44 = vadd.f32 %v2148_v42, %v2089_v43 }
0x2942   :  { %v2476_v45 = vpop.f32.mrf.mxu0 }
0x2943   :  { %2094 = vst.msk [vmem:[%s3121_s9] sm:$0xff] %vm2093_vm3, %v2090_v44 }
0x2944   :  { %2099 = vsyncpa [#allocation6], 1 }

</bundles_post_ra>
